<compile_context>
chip_gen: v7x
topology: tpu7x:2x2x1
jax: 0.10.0
libtpu: 0.0.40
codegen_flags: <defaults>
</compile_context>

<pallas_src>
import functools

import jax
import jax.numpy as jnp
from jax.experimental import pallas as pl
from jax.experimental.pallas import tpu as pltpu


def _round_up(x, m):
    return (x + m - 1) // m * m


def _auto_batch_blocks(batch):
    """nb=1 on single-TensorCore chips (v5e/v6e); split only on v7x or huge batches."""
    try:
        kind = jax.devices()[0].device_kind.lower()
    except Exception:  # pragma: no cover
        kind = ""
    n_cores = 2 if "v7" in kind else 1
    # Fill the MXU rows (target ~256) before splitting the batch at all.
    nb = max(1, -(-batch // 256))
    if n_cores > 1 and batch >= 2 * 8:
        nb = max(nb, n_cores)
    return nb


def _lstm_fused_kernel(x_ref, wih_ref, whh_ref, b_ref, o_ref,
                       h_sc, c_sc, gx_sc, *, unroll):
    """Fused LSTM block: hoisted input projection for TT timesteps -> VMEM scratch,
    then the sequential recurrence with h/c carried in registers."""
    t_blk = pl.program_id(1)

    @pl.when(t_blk == 0)
    def _():
        # Start of a batch block: zero the recurrent state.
        h_sc[...] = jnp.zeros_like(h_sc)
        c_sc[...] = jnp.zeros_like(c_sc)

    tt, bb, d = x_ref.shape            # static block sizes
    hp = h_sc.shape[-1]                # padded hidden size (multiple of 128)
    cdt = wih_ref.dtype                # MXU operand dtype (f32 or bf16); acc is f32

    # ---- hoisted input projection: one big, MXU-friendly matmul per time block ----
    x2 = x_ref[...].reshape(tt * bb, d).astype(cdt)
    gx = jnp.dot(x2, wih_ref[...], preferred_element_type=jnp.float32) + b_ref[...]
    gx_sc[...] = gx.reshape(tt, bb, 4 * hp)

    whh = whh_ref[...]                 # VMEM-resident (HP, 4*HP), constant over grid

    # ---- recurrence: h/c live in vregs across the (partially) unrolled time loop --
    def step(t, carry):
        h, c = carry
        gates = gx_sc[t] + jnp.dot(h.astype(cdt), whh,
                                   preferred_element_type=jnp.float32)
        # Gate layout is [i, f, o, g]: one wide sigmoid + one tanh per step.
        ifo = jax.nn.sigmoid(gates[:, 0:3 * hp])
        g_g = jnp.tanh(gates[:, 3 * hp:4 * hp])
        i_g = ifo[:, 0 * hp:1 * hp]
        f_g = ifo[:, 1 * hp:2 * hp]
        o_g = ifo[:, 2 * hp:3 * hp]
        c_new = f_g * c + i_g * g_g
        h_new = o_g * jnp.tanh(c_new)
        o_ref[t] = h_new.astype(o_ref.dtype)
        return (h_new, c_new)

    h, c = jax.lax.fori_loop(0, tt, step, (h_sc[...], c_sc[...]), unroll=unroll)
    # Flush carried state to scratch once per time block (persists to the next one).
    h_sc[...] = h
    c_sc[...] = c


@functools.partial(
    jax.jit,
    static_argnames=("hidden_size", "time_block", "batch_blocks", "use_bf16_matmul"))
def lstm_output(x, w_ih, w_hh, b_ih, b_hh, *, hidden_size, time_block=None,
                batch_blocks=None, use_bf16_matmul=False):
    """Pallas LSTM forward. x: (T, B, D); weights in PyTorch layout:
    w_ih (4H, D), w_hh (4H, H), b_ih (4H,), b_hh (4H,). Returns (T, B, H) float32."""
    T, B, D = x.shape
    H = hidden_size

    # --- padded / blocked sizes ---------------------------------------------------
    HP = _round_up(H, 128)                               # lane-aligned hidden size
    nb = batch_blocks if batch_blocks is not None else _auto_batch_blocks(B)
    BB = _round_up(pl.cdiv(B, nb), 8)                    # sublane-aligned batch block
    BP = BB * nb

    x_itemsize = jnp.dtype(x.dtype).itemsize
    wdt = jnp.bfloat16 if use_bf16_matmul else jnp.float32
    w_itemsize = jnp.dtype(wdt).itemsize

    # Timesteps per grid step: amortize per-grid-step overhead while keeping the
    # block-sized buffers (gx scratch dominates) within a modest VMEM budget.
    if time_block is None:
        budget = 4 * 1024 * 1024
        per_t = BB * (4 * HP * 4 + 2 * HP * 4 + 2 * D * x_itemsize)
        TT = int(max(1, min(T, budget // per_t, 64)))
    else:
        TT = int(max(1, min(time_block, T)))
    TP = _round_up(T, TT)
    nt = TP // TT
    unroll = int(min(TT, 8))                             # partial unroll bounds vregs

    # --- glue: pad inputs & re-layout weights --------------------------------------
    x_p = jnp.zeros((TP, BP, D), x.dtype).at[:T, :B, :].set(x)

    # PyTorch gate order is [i, f, g, o]; re-order to [i, f, o, g] so the three
    # sigmoid gates form one contiguous lane-aligned (3*HP) slab.
    perm = jnp.array([0, 1, 3, 2], dtype=jnp.int32)

    wih_t = jnp.transpose(w_ih).astype(jnp.float32).reshape(D, 4, H)[:, perm, :]
    wih_p = (jnp.zeros((D, 4, HP), jnp.float32)
             .at[:, :, :H].set(wih_t).reshape(D, 4 * HP).astype(wdt))

    whh_t = jnp.transpose(w_hh).astype(jnp.float32).reshape(H, 4, H)[:, perm, :]
    whh_p = (jnp.zeros((HP, 4, HP), jnp.float32)
             .at[:H, :, :H].set(whh_t).reshape(HP, 4 * HP).astype(wdt))

    bias = (b_ih + b_hh).astype(jnp.float32).reshape(4, H)[perm, :]
    bias_p = (jnp.zeros((4, HP), jnp.float32)
              .at[:, :H].set(bias).reshape(1, 4 * HP))

    # --- VMEM actually needed by this tiling (x2 margin), capped for v7x's 64 MiB --
    vmem_est = (2 * TT * BB * D * x_itemsize       # x block (double-buffered)
                + 2 * D * 4 * HP * w_itemsize      # W_ih^T (constant block)
                + 2 * HP * 4 * HP * w_itemsize     # W_hh^T (constant block)
                + 2 * 4 * HP * 4                   # bias
                + 2 * TT * BB * HP * 4             # output block
                + TT * BB * 4 * HP * 4             # gx scratch
                + 2 * BB * HP * 4)                 # h / c state
    vmem_limit = int(min(48 * 1024 * 1024, max(16 * 1024 * 1024, 2 * vmem_est)))

    kernel = functools.partial(_lstm_fused_kernel, unroll=unroll)

    out_p = pl.pallas_call(
        kernel,
        out_shape=jax.ShapeDtypeStruct((TP, BP, HP), jnp.float32),
        grid_spec=pltpu.PrefetchScalarGridSpec(
            num_scalar_prefetch=0,
            grid=(nb, nt),
            in_specs=[
                pl.BlockSpec((TT, BB, D), lambda b, t: (t, b, 0)),
                pl.BlockSpec((D, 4 * HP), lambda b, t: (0, 0)),    # fetched once
                pl.BlockSpec((HP, 4 * HP), lambda b, t: (0, 0)),   # fetched once
                pl.BlockSpec((1, 4 * HP), lambda b, t: (0, 0)),    # fetched once
            ],
            out_specs=pl.BlockSpec((TT, BB, HP), lambda b, t: (t, b, 0)),
            scratch_shapes=[
                pltpu.VMEM((BB, HP), jnp.float32),          # h state (across t blocks)
                pltpu.VMEM((BB, HP), jnp.float32),          # c state (across t blocks)
                pltpu.VMEM((TT, BB, 4 * HP), jnp.float32),  # hoisted input projection
            ],
        ),
        compiler_params=pltpu.CompilerParams(
            # Time axis MUST stay "arbitrary" & innermost: h/c scratch carries over it.
            dimension_semantics=("parallel", "arbitrary"),
            vmem_limit_bytes=vmem_limit,
        ),
    )(x_p, wih_p, whh_p, bias_p)

    return out_p[:T, :B, :H]


def _lstm_reference(x, w_ih, w_hh, b_ih, b_hh, hidden_size):
    """Pure-JAX reference (matches PyTorch nn.LSTM single-layer forward)."""
    T, B, D = x.shape
    H = hidden_size
    bias = b_ih + b_hh

    def step(carry, x_t):
        h, c = carry
        gates = x_t @ w_ih.T + h @ w_hh.T + bias
        i = jax.nn.sigmoid(gates[:, 0 * H:1 * H])
        f = jax.nn.sigmoid(gates[:, 1 * H:2 * H])
        g = jnp.tanh(gates[:, 2 * H:3 * H])
        o = jax.nn.sigmoid(gates[:, 3 * H:4 * H])
        c = f * c + i * g
        h = o * jnp.tanh(c)
        return (h, c), h

    init = (jnp.zeros((B, H), jnp.float32), jnp.zeros((B, H), jnp.float32))
    _, ys = jax.lax.scan(step, init, x)
    return ys


if __name__ == "__main__":
    # Shapes implied by nn.LSTM(input_size=16, hidden_size=32), seq=8, batch=4.
    T, B, D, H = 8, 4, 16, 32

    key = jax.random.PRNGKey(0)
    k_x, k_wih, k_whh, k_bih, k_bhh = jax.random.split(key, 5)

    scale = 1.0 / jnp.sqrt(jnp.float32(H))
    x = jax.random.normal(k_x, (T, B, D), jnp.float32)
    w_ih = jax.random.uniform(k_wih, (4 * H, D), jnp.float32, -scale, scale)
    w_hh = jax.random.uniform(k_whh, (4 * H, H), jnp.float32, -scale, scale)
    b_ih = jax.random.uniform(k_bih, (4 * H,), jnp.float32, -scale, scale)
    b_hh = jax.random.uniform(k_bhh, (4 * H,), jnp.float32, -scale, scale)

    ref = _lstm_reference(x, w_ih, w_hh, b_ih, b_hh, H)

    # Exact-parity path (f32 MXU operands).
    out = jax.block_until_ready(
        lstm_output(x, w_ih, w_hh, b_ih, b_hh, hidden_size=H))
    assert out.shape == (T, B, H)
    assert jnp.max(jnp.abs(out - ref)) < 5e-4

    # Fast path (bf16 MXU operands, f32 accumulation/state) — looser tolerance.
    out_bf = jax.block_until_ready(
        lstm_output(x, w_ih, w_hh, b_ih, b_hh, hidden_size=H, use_bf16_matmul=True))
    assert out_bf.shape == (T, B, H)
    assert jnp.max(jnp.abs(out_bf - ref)) < 3e-2

    print("KERNEL_OK")
</pallas_src>

<mosaic_0001>
module attributes {stable_mosaic.version = 11 : i64} {
  func.func @_lstm_fused_kernel(%arg0: i32, %arg1: i32, %arg2: memref<8x8x16xf32, #tpu.memory_space<vmem>>, %arg3: memref<16x512xf32, #tpu.memory_space<vmem>>, %arg4: memref<128x512xf32, #tpu.memory_space<vmem>>, %arg5: memref<1x512xf32, #tpu.memory_space<vmem>>, %arg6: memref<8x8x128xf32, #tpu.memory_space<vmem>>, %arg7: memref<8x128xf32, #tpu.memory_space<vmem>>, %arg8: memref<8x128xf32, #tpu.memory_space<vmem>>, %arg9: memref<8x8x512xf32, #tpu.memory_space<vmem>>) attributes {dimension_semantics = [#tpu.dimension_semantics<parallel>, #tpu.dimension_semantics<arbitrary>], iteration_bounds = array<i64: 1, 1>, scalar_prefetch = 0 : i64, scratch_operands = 3 : i64, tpu.core_type = #tpu.core_type<tc>, window_params = [{transform_indices = @transform_0, window_bounds = array<i64: 8, 8, 16>}, {pipeline_mode = #tpu.pipeline_mode<synchronous>, transform_indices = @transform_1, window_bounds = array<i64: 16, 512>}, {pipeline_mode = #tpu.pipeline_mode<synchronous>, transform_indices = @transform_2, window_bounds = array<i64: 128, 512>}, {pipeline_mode = #tpu.pipeline_mode<synchronous>, transform_indices = @transform_3, window_bounds = array<i64: 1, 512>}, {transform_indices = @transform_4, window_bounds = array<i64: 8, 8, 128>}]} {
    %c0_i32 = arith.constant 0 : i32
    %0 = arith.cmpi eq, %arg1, %c0_i32 : i32
    %1 = arith.extui %0 : i1 to i32
    %c0_i32_0 = arith.constant 0 : i32
    %2 = arith.cmpi ne, %1, %c0_i32_0 : i32
    scf.if %2 {
      %cst_69 = arith.constant 0.000000e+00 : f32
      %217 = vector.broadcast %cst_69 : f32 to vector<8x128xf32>
      %c0_70 = arith.constant 0 : index
      %c0_71 = arith.constant 0 : index
      %218 = vector.load %arg7[%c0_70, %c0_71] : memref<8x128xf32, #tpu.memory_space<vmem>>, vector<8x128xf32>
      tpu.vector_store %arg7[%c0_70, %c0_71], %217 {strides = array<i32>} : memref<8x128xf32, #tpu.memory_space<vmem>>, vector<8x128xf32>,
      %cst_72 = arith.constant 0.000000e+00 : f32
      %219 = vector.broadcast %cst_72 : f32 to vector<8x128xf32>
      %c0_73 = arith.constant 0 : index
      %c0_74 = arith.constant 0 : index
      %220 = vector.load %arg8[%c0_73, %c0_74] : memref<8x128xf32, #tpu.memory_space<vmem>>, vector<8x128xf32>
      tpu.vector_store %arg8[%c0_73, %c0_74], %219 {strides = array<i32>} : memref<8x128xf32, #tpu.memory_space<vmem>>, vector<8x128xf32>,
    } else {
    }
    %c0 = arith.constant 0 : index
    %c0_1 = arith.constant 0 : index
    %c0_2 = arith.constant 0 : index
    %3 = vector.load %arg2[%c0, %c0_1, %c0_2] : memref<8x8x16xf32, #tpu.memory_space<vmem>>, vector<8x8x16xf32>
    %4 = vector.shape_cast %3 : vector<8x8x16xf32> to vector<64x16xf32>
    %c0_3 = arith.constant 0 : index
    %c0_4 = arith.constant 0 : index
    %5 = vector.load %arg3[%c0_3, %c0_4] : memref<16x512xf32, #tpu.memory_space<vmem>>, vector<16x512xf32>
    %cst = arith.constant dense<0.000000e+00> : vector<64x512xf32>
    %6 = tpu.matmul %4, %5, %cst {dimension_numbers = #tpu.dot_dimension_numbers<[1], [0], [0], [1], [0, 0, 1, 1], [], []>} : vector<64x16xf32>, vector<16x512xf32>, vector<64x512xf32> -> vector<64x512xf32>
    %c0_5 = arith.constant 0 : index
    %c0_6 = arith.constant 0 : index
    %7 = vector.load %arg5[%c0_5, %c0_6] : memref<1x512xf32, #tpu.memory_space<vmem>>, vector<1x512xf32>
    %8 = vector.broadcast %7 : vector<1x512xf32> to vector<64x512xf32>
    %9 = arith.addf %6, %8 : vector<64x512xf32>
    %10 = vector.shape_cast %9 : vector<64x512xf32> to vector<8x8x512xf32>
    %c0_7 = arith.constant 0 : index
    %c0_8 = arith.constant 0 : index
    %c0_9 = arith.constant 0 : index
    %11 = vector.load %arg9[%c0_7, %c0_8, %c0_9] : memref<8x8x512xf32, #tpu.memory_space<vmem>>, vector<8x8x512xf32>
    tpu.vector_store %arg9[%c0_7, %c0_8, %c0_9], %10 {strides = array<i32>} : memref<8x8x512xf32, #tpu.memory_space<vmem>>, vector<8x8x512xf32>,
    %c0_10 = arith.constant 0 : index
    %c0_11 = arith.constant 0 : index
    %12 = vector.load %arg4[%c0_10, %c0_11] : memref<128x512xf32, #tpu.memory_space<vmem>>, vector<128x512xf32>
    %c0_12 = arith.constant 0 : index
    %c0_13 = arith.constant 0 : index
    %13 = vector.load %arg7[%c0_12, %c0_13] : memref<8x128xf32, #tpu.memory_space<vmem>>, vector<8x128xf32>
    %c0_14 = arith.constant 0 : index
    %c0_15 = arith.constant 0 : index
    %14 = vector.load %arg8[%c0_14, %c0_15] : memref<8x128xf32, #tpu.memory_space<vmem>>, vector<8x128xf32>
    %c0_i32_16 = arith.constant 0 : i32
    %15 = arith.index_cast %c0_i32_16 : i32 to index
    %c0_17 = arith.constant 0 : index
    %c0_18 = arith.constant 0 : index
    %16 = vector.load %arg9[%15, %c0_17, %c0_18] : memref<8x8x512xf32, #tpu.memory_space<vmem>>, vector<1x8x512xf32>
    %17 = vector.shape_cast %16 : vector<1x8x512xf32> to vector<8x512xf32>
    %cst_19 = arith.constant dense<0.000000e+00> : vector<8x512xf32>
    %18 = tpu.matmul %13, %12, %cst_19 {dimension_numbers = #tpu.dot_dimension_numbers<[1], [0], [0], [1], [0, 0, 1, 1], [], []>} : vector<8x128xf32>, vector<128x512xf32>, vector<8x512xf32> -> vector<8x512xf32>
    %19 = arith.addf %17, %18 : vector<8x512xf32>
    %20 = vector.extract_strided_slice %19 {offsets = [0, 0], sizes = [8, 384], strides = [1, 1]} : vector<8x512xf32> to vector<8x384xf32>
    %21 = arith.negf %20 : vector<8x384xf32>
    %22 = math.exp %21 : vector<8x384xf32>
    %cst_20 = arith.constant 1.000000e+00 : f32
    %23 = vector.broadcast %cst_20 : f32 to vector<8x384xf32>
    %24 = arith.addf %23, %22 : vector<8x384xf32>
    %25 = arith.divf %23, %24 : vector<8x384xf32>
    %26 = vector.extract_strided_slice %19 {offsets = [0, 384], sizes = [8, 128], strides = [1, 1]} : vector<8x512xf32> to vector<8x128xf32>
    %27 = math.tanh %26 : vector<8x128xf32>
    %28 = vector.extract_strided_slice %25 {offsets = [0, 0], sizes = [8, 128], strides = [1, 1]} : vector<8x384xf32> to vector<8x128xf32>
    %29 = vector.extract_strided_slice %25 {offsets = [0, 128], sizes = [8, 128], strides = [1, 1]} : vector<8x384xf32> to vector<8x128xf32>
    %30 = vector.extract_strided_slice %25 {offsets = [0, 256], sizes = [8, 128], strides = [1, 1]} : vector<8x384xf32> to vector<8x128xf32>
    %31 = arith.mulf %29, %14 : vector<8x128xf32>
    %32 = arith.mulf %28, %27 : vector<8x128xf32>
    %33 = arith.addf %31, %32 : vector<8x128xf32>
    %34 = math.tanh %33 : vector<8x128xf32>
    %35 = arith.mulf %30, %34 : vector<8x128xf32>
    %36 = arith.index_cast %c0_i32_16 : i32 to index
    %c0_21 = arith.constant 0 : index
    %c0_22 = arith.constant 0 : index
    %37 = vector.load %arg6[%36, %c0_21, %c0_22] : memref<8x8x128xf32, #tpu.memory_space<vmem>>, vector<1x8x128xf32>
    %38 = vector.shape_cast %37 : vector<1x8x128xf32> to vector<8x128xf32>
    %39 = vector.shape_cast %35 : vector<8x128xf32> to vector<1x8x128xf32>
    tpu.vector_store %arg6[%36, %c0_21, %c0_22], %39 {strides = array<i32>} : memref<8x8x128xf32, #tpu.memory_space<vmem>>, vector<1x8x128xf32>,
    %c1_i32 = arith.constant 1 : i32
    %40 = arith.index_cast %c1_i32 : i32 to index
    %c0_23 = arith.constant 0 : index
    %c0_24 = arith.constant 0 : index
    %41 = vector.load %arg9[%40, %c0_23, %c0_24] : memref<8x8x512xf32, #tpu.memory_space<vmem>>, vector<1x8x512xf32>
    %42 = vector.shape_cast %41 : vector<1x8x512xf32> to vector<8x512xf32>
    %cst_25 = arith.constant dense<0.000000e+00> : vector<8x512xf32>
    %43 = tpu.matmul %35, %12, %cst_25 {dimension_numbers = #tpu.dot_dimension_numbers<[1], [0], [0], [1], [0, 0, 1, 1], [], []>} : vector<8x128xf32>, vector<128x512xf32>, vector<8x512xf32> -> vector<8x512xf32>
    %44 = arith.addf %42, %43 : vector<8x512xf32>
    %45 = vector.extract_strided_slice %44 {offsets = [0, 0], sizes = [8, 384], strides = [1, 1]} : vector<8x512xf32> to vector<8x384xf32>
    %46 = arith.negf %45 : vector<8x384xf32>
    %47 = math.exp %46 : vector<8x384xf32>
    %cst_26 = arith.constant 1.000000e+00 : f32
    %48 = vector.broadcast %cst_26 : f32 to vector<8x384xf32>
    %49 = arith.addf %48, %47 : vector<8x384xf32>
    %50 = arith.divf %48, %49 : vector<8x384xf32>
    %51 = vector.extract_strided_slice %44 {offsets = [0, 384], sizes = [8, 128], strides = [1, 1]} : vector<8x512xf32> to vector<8x128xf32>
    %52 = math.tanh %51 : vector<8x128xf32>
    %53 = vector.extract_strided_slice %50 {offsets = [0, 0], sizes = [8, 128], strides = [1, 1]} : vector<8x384xf32> to vector<8x128xf32>
    %54 = vector.extract_strided_slice %50 {offsets = [0, 128], sizes = [8, 128], strides = [1, 1]} : vector<8x384xf32> to vector<8x128xf32>
    %55 = vector.extract_strided_slice %50 {offsets = [0, 256], sizes = [8, 128], strides = [1, 1]} : vector<8x384xf32> to vector<8x128xf32>
    %56 = arith.mulf %54, %33 : vector<8x128xf32>
    %57 = arith.mulf %53, %52 : vector<8x128xf32>
    %58 = arith.addf %56, %57 : vector<8x128xf32>
    %59 = math.tanh %58 : vector<8x128xf32>
    %60 = arith.mulf %55, %59 : vector<8x128xf32>
    %61 = arith.index_cast %c1_i32 : i32 to index
    %c0_27 = arith.constant 0 : index
    %c0_28 = arith.constant 0 : index
    %62 = vector.load %arg6[%61, %c0_27, %c0_28] : memref<8x8x128xf32, #tpu.memory_space<vmem>>, vector<1x8x128xf32>
    %63 = vector.shape_cast %62 : vector<1x8x128xf32> to vector<8x128xf32>
    %64 = vector.shape_cast %60 : vector<8x128xf32> to vector<1x8x128xf32>
    tpu.vector_store %arg6[%61, %c0_27, %c0_28], %64 {strides = array<i32>} : memref<8x8x128xf32, #tpu.memory_space<vmem>>, vector<1x8x128xf32>,
    %c2_i32 = arith.constant 2 : i32
    %65 = arith.index_cast %c2_i32 : i32 to index
    %c0_29 = arith.constant 0 : index
    %c0_30 = arith.constant 0 : index
    %66 = vector.load %arg9[%65, %c0_29, %c0_30] : memref<8x8x512xf32, #tpu.memory_space<vmem>>, vector<1x8x512xf32>
    %67 = vector.shape_cast %66 : vector<1x8x512xf32> to vector<8x512xf32>
    %cst_31 = arith.constant dense<0.000000e+00> : vector<8x512xf32>
    %68 = tpu.matmul %60, %12, %cst_31 {dimension_numbers = #tpu.dot_dimension_numbers<[1], [0], [0], [1], [0, 0, 1, 1], [], []>} : vector<8x128xf32>, vector<128x512xf32>, vector<8x512xf32> -> vector<8x512xf32>
    %69 = arith.addf %67, %68 : vector<8x512xf32>
    %70 = vector.extract_strided_slice %69 {offsets = [0, 0], sizes = [8, 384], strides = [1, 1]} : vector<8x512xf32> to vector<8x384xf32>
    %71 = arith.negf %70 : vector<8x384xf32>
    %72 = math.exp %71 : vector<8x384xf32>
    %cst_32 = arith.constant 1.000000e+00 : f32
    %73 = vector.broadcast %cst_32 : f32 to vector<8x384xf32>
    %74 = arith.addf %73, %72 : vector<8x384xf32>
    %75 = arith.divf %73, %74 : vector<8x384xf32>
    %76 = vector.extract_strided_slice %69 {offsets = [0, 384], sizes = [8, 128], strides = [1, 1]} : vector<8x512xf32> to vector<8x128xf32>
    %77 = math.tanh %76 : vector<8x128xf32>
    %78 = vector.extract_strided_slice %75 {offsets = [0, 0], sizes = [8, 128], strides = [1, 1]} : vector<8x384xf32> to vector<8x128xf32>
    %79 = vector.extract_strided_slice %75 {offsets = [0, 128], sizes = [8, 128], strides = [1, 1]} : vector<8x384xf32> to vector<8x128xf32>
    %80 = vector.extract_strided_slice %75 {offsets = [0, 256], sizes = [8, 128], strides = [1, 1]} : vector<8x384xf32> to vector<8x128xf32>
    %81 = arith.mulf %79, %58 : vector<8x128xf32>
    %82 = arith.mulf %78, %77 : vector<8x128xf32>
    %83 = arith.addf %81, %82 : vector<8x128xf32>
    %84 = math.tanh %83 : vector<8x128xf32>
    %85 = arith.mulf %80, %84 : vector<8x128xf32>
    %86 = arith.index_cast %c2_i32 : i32 to index
    %c0_33 = arith.constant 0 : index
    %c0_34 = arith.constant 0 : index
    %87 = vector.load %arg6[%86, %c0_33, %c0_34] : memref<8x8x128xf32, #tpu.memory_space<vmem>>, vector<1x8x128xf32>
    %88 = vector.shape_cast %87 : vector<1x8x128xf32> to vector<8x128xf32>
    %89 = vector.shape_cast %85 : vector<8x128xf32> to vector<1x8x128xf32>
    tpu.vector_store %arg6[%86, %c0_33, %c0_34], %89 {strides = array<i32>} : memref<8x8x128xf32, #tpu.memory_space<vmem>>, vector<1x8x128xf32>,
    %c3_i32 = arith.constant 3 : i32
    %90 = arith.index_cast %c3_i32 : i32 to index
    %c0_35 = arith.constant 0 : index
    %c0_36 = arith.constant 0 : index
    %91 = vector.load %arg9[%90, %c0_35, %c0_36] : memref<8x8x512xf32, #tpu.memory_space<vmem>>, vector<1x8x512xf32>
    %92 = vector.shape_cast %91 : vector<1x8x512xf32> to vector<8x512xf32>
    %cst_37 = arith.constant dense<0.000000e+00> : vector<8x512xf32>
    %93 = tpu.matmul %85, %12, %cst_37 {dimension_numbers = #tpu.dot_dimension_numbers<[1], [0], [0], [1], [0, 0, 1, 1], [], []>} : vector<8x128xf32>, vector<128x512xf32>, vector<8x512xf32> -> vector<8x512xf32>
    %94 = arith.addf %92, %93 : vector<8x512xf32>
    %95 = vector.extract_strided_slice %94 {offsets = [0, 0], sizes = [8, 384], strides = [1, 1]} : vector<8x512xf32> to vector<8x384xf32>
    %96 = arith.negf %95 : vector<8x384xf32>
    %97 = math.exp %96 : vector<8x384xf32>
    %cst_38 = arith.constant 1.000000e+00 : f32
    %98 = vector.broadcast %cst_38 : f32 to vector<8x384xf32>
    %99 = arith.addf %98, %97 : vector<8x384xf32>
    %100 = arith.divf %98, %99 : vector<8x384xf32>
    %101 = vector.extract_strided_slice %94 {offsets = [0, 384], sizes = [8, 128], strides = [1, 1]} : vector<8x512xf32> to vector<8x128xf32>
    %102 = math.tanh %101 : vector<8x128xf32>
    %103 = vector.extract_strided_slice %100 {offsets = [0, 0], sizes = [8, 128], strides = [1, 1]} : vector<8x384xf32> to vector<8x128xf32>
    %104 = vector.extract_strided_slice %100 {offsets = [0, 128], sizes = [8, 128], strides = [1, 1]} : vector<8x384xf32> to vector<8x128xf32>
    %105 = vector.extract_strided_slice %100 {offsets = [0, 256], sizes = [8, 128], strides = [1, 1]} : vector<8x384xf32> to vector<8x128xf32>
    %106 = arith.mulf %104, %83 : vector<8x128xf32>
    %107 = arith.mulf %103, %102 : vector<8x128xf32>
    %108 = arith.addf %106, %107 : vector<8x128xf32>
    %109 = math.tanh %108 : vector<8x128xf32>
    %110 = arith.mulf %105, %109 : vector<8x128xf32>
    %111 = arith.index_cast %c3_i32 : i32 to index
    %c0_39 = arith.constant 0 : index
    %c0_40 = arith.constant 0 : index
    %112 = vector.load %arg6[%111, %c0_39, %c0_40] : memref<8x8x128xf32, #tpu.memory_space<vmem>>, vector<1x8x128xf32>
    %113 = vector.shape_cast %112 : vector<1x8x128xf32> to vector<8x128xf32>
    %114 = vector.shape_cast %110 : vector<8x128xf32> to vector<1x8x128xf32>
    tpu.vector_store %arg6[%111, %c0_39, %c0_40], %114 {strides = array<i32>} : memref<8x8x128xf32, #tpu.memory_space<vmem>>, vector<1x8x128xf32>,
    %c4_i32 = arith.constant 4 : i32
    %115 = arith.index_cast %c4_i32 : i32 to index
    %c0_41 = arith.constant 0 : index
    %c0_42 = arith.constant 0 : index
    %116 = vector.load %arg9[%115, %c0_41, %c0_42] : memref<8x8x512xf32, #tpu.memory_space<vmem>>, vector<1x8x512xf32>
    %117 = vector.shape_cast %116 : vector<1x8x512xf32> to vector<8x512xf32>
    %cst_43 = arith.constant dense<0.000000e+00> : vector<8x512xf32>
    %118 = tpu.matmul %110, %12, %cst_43 {dimension_numbers = #tpu.dot_dimension_numbers<[1], [0], [0], [1], [0, 0, 1, 1], [], []>} : vector<8x128xf32>, vector<128x512xf32>, vector<8x512xf32> -> vector<8x512xf32>
    %119 = arith.addf %117, %118 : vector<8x512xf32>
    %120 = vector.extract_strided_slice %119 {offsets = [0, 0], sizes = [8, 384], strides = [1, 1]} : vector<8x512xf32> to vector<8x384xf32>
    %121 = arith.negf %120 : vector<8x384xf32>
    %122 = math.exp %121 : vector<8x384xf32>
    %cst_44 = arith.constant 1.000000e+00 : f32
    %123 = vector.broadcast %cst_44 : f32 to vector<8x384xf32>
    %124 = arith.addf %123, %122 : vector<8x384xf32>
    %125 = arith.divf %123, %124 : vector<8x384xf32>
    %126 = vector.extract_strided_slice %119 {offsets = [0, 384], sizes = [8, 128], strides = [1, 1]} : vector<8x512xf32> to vector<8x128xf32>
    %127 = math.tanh %126 : vector<8x128xf32>
    %128 = vector.extract_strided_slice %125 {offsets = [0, 0], sizes = [8, 128], strides = [1, 1]} : vector<8x384xf32> to vector<8x128xf32>
    %129 = vector.extract_strided_slice %125 {offsets = [0, 128], sizes = [8, 128], strides = [1, 1]} : vector<8x384xf32> to vector<8x128xf32>
    %130 = vector.extract_strided_slice %125 {offsets = [0, 256], sizes = [8, 128], strides = [1, 1]} : vector<8x384xf32> to vector<8x128xf32>
    %131 = arith.mulf %129, %108 : vector<8x128xf32>
    %132 = arith.mulf %128, %127 : vector<8x128xf32>
    %133 = arith.addf %131, %132 : vector<8x128xf32>
    %134 = math.tanh %133 : vector<8x128xf32>
    %135 = arith.mulf %130, %134 : vector<8x128xf32>
    %136 = arith.index_cast %c4_i32 : i32 to index
    %c0_45 = arith.constant 0 : index
    %c0_46 = arith.constant 0 : index
    %137 = vector.load %arg6[%136, %c0_45, %c0_46] : memref<8x8x128xf32, #tpu.memory_space<vmem>>, vector<1x8x128xf32>
    %138 = vector.shape_cast %137 : vector<1x8x128xf32> to vector<8x128xf32>
    %139 = vector.shape_cast %135 : vector<8x128xf32> to vector<1x8x128xf32>
    tpu.vector_store %arg6[%136, %c0_45, %c0_46], %139 {strides = array<i32>} : memref<8x8x128xf32, #tpu.memory_space<vmem>>, vector<1x8x128xf32>,
    %c5_i32 = arith.constant 5 : i32
    %140 = arith.index_cast %c5_i32 : i32 to index
    %c0_47 = arith.constant 0 : index
    %c0_48 = arith.constant 0 : index
    %141 = vector.load %arg9[%140, %c0_47, %c0_48] : memref<8x8x512xf32, #tpu.memory_space<vmem>>, vector<1x8x512xf32>
    %142 = vector.shape_cast %141 : vector<1x8x512xf32> to vector<8x512xf32>
    %cst_49 = arith.constant dense<0.000000e+00> : vector<8x512xf32>
    %143 = tpu.matmul %135, %12, %cst_49 {dimension_numbers = #tpu.dot_dimension_numbers<[1], [0], [0], [1], [0, 0, 1, 1], [], []>} : vector<8x128xf32>, vector<128x512xf32>, vector<8x512xf32> -> vector<8x512xf32>
    %144 = arith.addf %142, %143 : vector<8x512xf32>
    %145 = vector.extract_strided_slice %144 {offsets = [0, 0], sizes = [8, 384], strides = [1, 1]} : vector<8x512xf32> to vector<8x384xf32>
    %146 = arith.negf %145 : vector<8x384xf32>
    %147 = math.exp %146 : vector<8x384xf32>
    %cst_50 = arith.constant 1.000000e+00 : f32
    %148 = vector.broadcast %cst_50 : f32 to vector<8x384xf32>
    %149 = arith.addf %148, %147 : vector<8x384xf32>
    %150 = arith.divf %148, %149 : vector<8x384xf32>
    %151 = vector.extract_strided_slice %144 {offsets = [0, 384], sizes = [8, 128], strides = [1, 1]} : vector<8x512xf32> to vector<8x128xf32>
    %152 = math.tanh %151 : vector<8x128xf32>
    %153 = vector.extract_strided_slice %150 {offsets = [0, 0], sizes = [8, 128], strides = [1, 1]} : vector<8x384xf32> to vector<8x128xf32>
    %154 = vector.extract_strided_slice %150 {offsets = [0, 128], sizes = [8, 128], strides = [1, 1]} : vector<8x384xf32> to vector<8x128xf32>
    %155 = vector.extract_strided_slice %150 {offsets = [0, 256], sizes = [8, 128], strides = [1, 1]} : vector<8x384xf32> to vector<8x128xf32>
    %156 = arith.mulf %154, %133 : vector<8x128xf32>
    %157 = arith.mulf %153, %152 : vector<8x128xf32>
    %158 = arith.addf %156, %157 : vector<8x128xf32>
    %159 = math.tanh %158 : vector<8x128xf32>
    %160 = arith.mulf %155, %159 : vector<8x128xf32>
    %161 = arith.index_cast %c5_i32 : i32 to index
    %c0_51 = arith.constant 0 : index
    %c0_52 = arith.constant 0 : index
    %162 = vector.load %arg6[%161, %c0_51, %c0_52] : memref<8x8x128xf32, #tpu.memory_space<vmem>>, vector<1x8x128xf32>
    %163 = vector.shape_cast %162 : vector<1x8x128xf32> to vector<8x128xf32>
    %164 = vector.shape_cast %160 : vector<8x128xf32> to vector<1x8x128xf32>
    tpu.vector_store %arg6[%161, %c0_51, %c0_52], %164 {strides = array<i32>} : memref<8x8x128xf32, #tpu.memory_space<vmem>>, vector<1x8x128xf32>,
    %c6_i32 = arith.constant 6 : i32
    %165 = arith.index_cast %c6_i32 : i32 to index
    %c0_53 = arith.constant 0 : index
    %c0_54 = arith.constant 0 : index
    %166 = vector.load %arg9[%165, %c0_53, %c0_54] : memref<8x8x512xf32, #tpu.memory_space<vmem>>, vector<1x8x512xf32>
    %167 = vector.shape_cast %166 : vector<1x8x512xf32> to vector<8x512xf32>
    %cst_55 = arith.constant dense<0.000000e+00> : vector<8x512xf32>
    %168 = tpu.matmul %160, %12, %cst_55 {dimension_numbers = #tpu.dot_dimension_numbers<[1], [0], [0], [1], [0, 0, 1, 1], [], []>} : vector<8x128xf32>, vector<128x512xf32>, vector<8x512xf32> -> vector<8x512xf32>
    %169 = arith.addf %167, %168 : vector<8x512xf32>
    %170 = vector.extract_strided_slice %169 {offsets = [0, 0], sizes = [8, 384], strides = [1, 1]} : vector<8x512xf32> to vector<8x384xf32>
    %171 = arith.negf %170 : vector<8x384xf32>
    %172 = math.exp %171 : vector<8x384xf32>
    %cst_56 = arith.constant 1.000000e+00 : f32
    %173 = vector.broadcast %cst_56 : f32 to vector<8x384xf32>
    %174 = arith.addf %173, %172 : vector<8x384xf32>
    %175 = arith.divf %173, %174 : vector<8x384xf32>
    %176 = vector.extract_strided_slice %169 {offsets = [0, 384], sizes = [8, 128], strides = [1, 1]} : vector<8x512xf32> to vector<8x128xf32>
    %177 = math.tanh %176 : vector<8x128xf32>
    %178 = vector.extract_strided_slice %175 {offsets = [0, 0], sizes = [8, 128], strides = [1, 1]} : vector<8x384xf32> to vector<8x128xf32>
    %179 = vector.extract_strided_slice %175 {offsets = [0, 128], sizes = [8, 128], strides = [1, 1]} : vector<8x384xf32> to vector<8x128xf32>
    %180 = vector.extract_strided_slice %175 {offsets = [0, 256], sizes = [8, 128], strides = [1, 1]} : vector<8x384xf32> to vector<8x128xf32>
    %181 = arith.mulf %179, %158 : vector<8x128xf32>
    %182 = arith.mulf %178, %177 : vector<8x128xf32>
    %183 = arith.addf %181, %182 : vector<8x128xf32>
    %184 = math.tanh %183 : vector<8x128xf32>
    %185 = arith.mulf %180, %184 : vector<8x128xf32>
    %186 = arith.index_cast %c6_i32 : i32 to index
    %c0_57 = arith.constant 0 : index
    %c0_58 = arith.constant 0 : index
    %187 = vector.load %arg6[%186, %c0_57, %c0_58] : memref<8x8x128xf32, #tpu.memory_space<vmem>>, vector<1x8x128xf32>
    %188 = vector.shape_cast %187 : vector<1x8x128xf32> to vector<8x128xf32>
    %189 = vector.shape_cast %185 : vector<8x128xf32> to vector<1x8x128xf32>
    tpu.vector_store %arg6[%186, %c0_57, %c0_58], %189 {strides = array<i32>} : memref<8x8x128xf32, #tpu.memory_space<vmem>>, vector<1x8x128xf32>,
    %c7_i32 = arith.constant 7 : i32
    %190 = arith.index_cast %c7_i32 : i32 to index
    %c0_59 = arith.constant 0 : index
    %c0_60 = arith.constant 0 : index
    %191 = vector.load %arg9[%190, %c0_59, %c0_60] : memref<8x8x512xf32, #tpu.memory_space<vmem>>, vector<1x8x512xf32>
    %192 = vector.shape_cast %191 : vector<1x8x512xf32> to vector<8x512xf32>
    %cst_61 = arith.constant dense<0.000000e+00> : vector<8x512xf32>
    %193 = tpu.matmul %185, %12, %cst_61 {dimension_numbers = #tpu.dot_dimension_numbers<[1], [0], [0], [1], [0, 0, 1, 1], [], []>} : vector<8x128xf32>, vector<128x512xf32>, vector<8x512xf32> -> vector<8x512xf32>
    %194 = arith.addf %192, %193 : vector<8x512xf32>
    %195 = vector.extract_strided_slice %194 {offsets = [0, 0], sizes = [8, 384], strides = [1, 1]} : vector<8x512xf32> to vector<8x384xf32>
    %196 = arith.negf %195 : vector<8x384xf32>
    %197 = math.exp %196 : vector<8x384xf32>
    %cst_62 = arith.constant 1.000000e+00 : f32
    %198 = vector.broadcast %cst_62 : f32 to vector<8x384xf32>
    %199 = arith.addf %198, %197 : vector<8x384xf32>
    %200 = arith.divf %198, %199 : vector<8x384xf32>
    %201 = vector.extract_strided_slice %194 {offsets = [0, 384], sizes = [8, 128], strides = [1, 1]} : vector<8x512xf32> to vector<8x128xf32>
    %202 = math.tanh %201 : vector<8x128xf32>
    %203 = vector.extract_strided_slice %200 {offsets = [0, 0], sizes = [8, 128], strides = [1, 1]} : vector<8x384xf32> to vector<8x128xf32>
    %204 = vector.extract_strided_slice %200 {offsets = [0, 128], sizes = [8, 128], strides = [1, 1]} : vector<8x384xf32> to vector<8x128xf32>
    %205 = vector.extract_strided_slice %200 {offsets = [0, 256], sizes = [8, 128], strides = [1, 1]} : vector<8x384xf32> to vector<8x128xf32>
    %206 = arith.mulf %204, %183 : vector<8x128xf32>
    %207 = arith.mulf %203, %202 : vector<8x128xf32>
    %208 = arith.addf %206, %207 : vector<8x128xf32>
    %209 = math.tanh %208 : vector<8x128xf32>
    %210 = arith.mulf %205, %209 : vector<8x128xf32>
    %211 = arith.index_cast %c7_i32 : i32 to index
    %c0_63 = arith.constant 0 : index
    %c0_64 = arith.constant 0 : index
    %212 = vector.load %arg6[%211, %c0_63, %c0_64] : memref<8x8x128xf32, #tpu.memory_space<vmem>>, vector<1x8x128xf32>
    %213 = vector.shape_cast %212 : vector<1x8x128xf32> to vector<8x128xf32>
    %214 = vector.shape_cast %210 : vector<8x128xf32> to vector<1x8x128xf32>
    tpu.vector_store %arg6[%211, %c0_63, %c0_64], %214 {strides = array<i32>} : memref<8x8x128xf32, #tpu.memory_space<vmem>>, vector<1x8x128xf32>,
    %c8_i32 = arith.constant 8 : i32
    %c0_65 = arith.constant 0 : index
    %c0_66 = arith.constant 0 : index
    %215 = vector.load %arg7[%c0_65, %c0_66] : memref<8x128xf32, #tpu.memory_space<vmem>>, vector<8x128xf32>
    tpu.vector_store %arg7[%c0_65, %c0_66], %210 {strides = array<i32>} : memref<8x128xf32, #tpu.memory_space<vmem>>, vector<8x128xf32>,
    %c0_67 = arith.constant 0 : index
    %c0_68 = arith.constant 0 : index
    %216 = vector.load %arg8[%c0_67, %c0_68] : memref<8x128xf32, #tpu.memory_space<vmem>>, vector<8x128xf32>
    tpu.vector_store %arg8[%c0_67, %c0_68], %208 {strides = array<i32>} : memref<8x128xf32, #tpu.memory_space<vmem>>, vector<8x128xf32>,
    return
  }
  func.func @transform_0(%arg0: i32, %arg1: i32) -> (i32, i32, i32) {
    %c0_i32 = arith.constant 0 : i32
    %c0_i32_0 = arith.constant 0 : i32
    return %arg1, %arg0, %c0_i32 : i32, i32, i32
  }
  func.func @transform_1(%arg0: i32, %arg1: i32) -> (i32, i32) {
    %c0_i32 = arith.constant 0 : i32
    %c0_i32_0 = arith.constant 0 : i32
    %c0_i32_1 = arith.constant 0 : i32
    return %c0_i32, %c0_i32_0 : i32, i32
  }
  func.func @transform_2(%arg0: i32, %arg1: i32) -> (i32, i32) {
    %c0_i32 = arith.constant 0 : i32
    %c0_i32_0 = arith.constant 0 : i32
    %c0_i32_1 = arith.constant 0 : i32
    return %c0_i32, %c0_i32_0 : i32, i32
  }
  func.func @transform_3(%arg0: i32, %arg1: i32) -> (i32, i32) {
    %c0_i32 = arith.constant 0 : i32
    %c0_i32_0 = arith.constant 0 : i32
    %c0_i32_1 = arith.constant 0 : i32
    return %c0_i32, %c0_i32_0 : i32, i32
  }
  func.func @transform_4(%arg0: i32, %arg1: i32) -> (i32, i32, i32) {
    %c0_i32 = arith.constant 0 : i32
    %c0_i32_0 = arith.constant 0 : i32
    return %arg1, %arg0, %c0_i32 : i32, i32, i32
  }
}

</mosaic_0001>

<bundles_post_ra>
// kernel: lstm_output.1
= control target key start
LH: loop header
LB: loop body
LE: loop exit
PB: predicated region body
PF: predicated region fallthrough
CT: control target
= control target key end

     0   :  { %v2590_v3 = vmov 0.0   ;;  %vm61_vm0 = vcmask 130048   ;;  %s3317_s1 = inlined_call_operand.vmem [shape: f32[16,512], index: 1, kind: input, shape index: {}]   ;;  %s3318_s0 = inlined_call_operand.vmem [shape: f32[8,8,16], index: 0, kind: input, shape index: {}]   ;;  %s3319_s2 = inlined_call_operand.vmem [shape: f32[128,512], index: 2, kind: input, shape index: {}]   ;;  %s3320_s3 = inlined_call_operand.vmem [shape: f32[1,512], index: 3, kind: input, shape index: {}]   ;;  %s3321_s4 = inlined_call_operand.vmem [shape: f32[8,8,128], index: 4, kind: output, shape index: {}]  }
   0x1   :  { %v32_v0 = vld [vmem:[%s3317_s1 + $0x8] sm:$0xff]  ;;  %v34_v2 = vld [vmem:[%s3317_s1 + $0x18] sm:$0xff]  ;;  %150 = vmatprep.mubr.f32.mxu0 %v2590_v3  ;;  %263 = vmatprep.mubr.f32.mxu1 %v2590_v3  ;;  %v31_v6 = vld [vmem:[%s3317_s1] sm:$0xff] }
   0x2   :  { %v36_v1 = vld [vmem:[%s3317_s1 + $0x28] sm:$0xff]  ;;  %v38_v5 = vld [vmem:[%s3317_s1 + $0x38] sm:$0xff]  ;;  %v35_v7 = vld [vmem:[%s3317_s1 + $0x20] sm:$0xff] }
   0x3   :  { %v1877_v4 = vpack.c.bf16 %v36_v1, %v32_v0  ;;  %v1881_v8 = vpack.c.bf16 %v38_v5, %v34_v2  ;;  %v1879_v9 = vpack.c.bf16 %v35_v7, %v31_v6  ;;  %v33_v10 = vld [vmem:[%s3317_s1 + $0x10] sm:$0xff]  ;;  %v23_v12 = vld [vmem:[%s3318_s0] sm:$0xff]  ;;  %v345_v14 = vld [vmem:[%s3319_s2 + $0x8] sm:$0xff] }
   0x4   :  { %v37_v11 = vld [vmem:[%s3317_s1 + $0x30] sm:$0xff]  ;;  %v349_v15 = vld [vmem:[%s3319_s2 + $0x28] sm:$0xff]  ;;  %v347_v16 = vld [vmem:[%s3319_s2 + $0x18] sm:$0xff] }
   0x5   :  { %1878 = vmatprep.subr.bf16.mxu0 %v1877_v4  ;;  %v1883_v13 = vpack.c.bf16 %v37_v11, %v33_v10  ;;  %1882 = vmatprep.subr.bf16.mxu1 %v1881_v8  ;;  %v2654_v17 = vpack.c.bf16 %v349_v15, %v345_v14  ;;  %v351_v18 = vld [vmem:[%s3319_s2 + $0x38] sm:$0xff]  ;;  %v344_v19 = vld [vmem:[%s3319_s2] sm:$0xff]  ;;  %v346_v23 = vld [vmem:[%s3319_s2 + $0x10] sm:$0xff] }
   0x6   :  { %1880 = vmatpush1.bf16.msra.mxu0 %v1879_v9  ;;  %v348_v20 = vld [vmem:[%s3319_s2 + $0x20] sm:$0xff]  ;;  %v2665_v21 = vpack.c.bf16 %v351_v18, %v347_v16  ;;  %v350_v24 = vld [vmem:[%s3319_s2 + $0x30] sm:$0xff]  ;;  %v353_v26 = vld [vmem:[%s3319_s2 + $0x48] sm:$0xff] }
   0x7   :  { %1884 = vmatpush1.bf16.msra.mxu1 %v1883_v13  ;;  %v2667_v22 = vpack.c.bf16 %v348_v20, %v344_v19  ;;  %1886 = vmatprep.subr.bf16.mxu0 %v2654_v17  ;;  %v2676_v25 = vpack.c.bf16 %v350_v24, %v346_v23  ;;  %v357_v27 = vld [vmem:[%s3319_s2 + $0x68] sm:$0xff]  ;;  %v355_v28 = vld [vmem:[%s3319_s2 + $0x58] sm:$0xff]  ;;  %v352_v31 = vld [vmem:[%s3319_s2 + $0x40] sm:$0xff] }
   0x8   :  { %1918 = vmatprep.subr.bf16.mxu1 %v2665_v21  ;;  %v2689_v29 = vpack.c.bf16 %v357_v27, %v353_v26  ;;  %v359_v30 = vld [vmem:[%s3319_s2 + $0x78] sm:$0xff]  ;;  %v356_v32 = vld [vmem:[%s3319_s2 + $0x60] sm:$0xff]  ;;  %v24_v33 = vld [vmem:[%s3318_s0 + $0x8] sm:$0xff] }
   0x9   :  { %1830 = vmatmul.mubr.msk.f32.vlgmr.msra.gmra.mrb[0].mxu0 %vm61_vm0, %v23_v12  ;;  %v2705_v34 = vpack.c.bf16 %v359_v30, %v355_v28  ;;  %v2707_v35 = vpack.c.bf16 %v356_v32, %v352_v31  ;;  %v354_v36 = vld [vmem:[%s3319_s2 + $0x50] sm:$0xff]  ;;  %v361_v39 = vld [vmem:[%s3319_s2 + $0x88] sm:$0xff]  ;;  %v363_v41 = vld [vmem:[%s3319_s2 + $0x98] sm:$0xff] }
   0xa   :  { %1838 = vmatmul.mubr.msk.f32.vlgmr.msra.gmra.mrb[0].mxu1 %vm61_vm0, %v23_v12  ;;  %1888 = vmatpush1.bf16.msra.mxu0 %v2667_v22  ;;  %v358_v37 = vld [vmem:[%s3319_s2 + $0x70] sm:$0xff]  ;;  %v365_v40 = vld [vmem:[%s3319_s2 + $0xa8] sm:$0xff]  ;;  %v367_v43 = vld [vmem:[%s3319_s2 + $0xb8] sm:$0xff] }
   0xb   :  { %1920 = vmatpush1.bf16.msra.mxu1 %v2676_v25  ;;  %156 = vmatprep.mubr.f32.mxu0 %v2590_v3  ;;  %v2717_v38 = vpack.c.bf16 %v358_v37, %v354_v36  ;;  %v2730_v42 = vpack.c.bf16 %v365_v40, %v361_v39  ;;  %v360_v44 = vld [vmem:[%s3319_s2 + $0x80] sm:$0xff]  ;;  %v25_v46 = vld [vmem:[%s3318_s0 + $0x10] sm:$0xff]  ;;  %v2746_v47 = vpack.c.bf16 %v367_v43, %v363_v41  ;;  %v369_v51 = vld [vmem:[%s3319_s2 + $0xc8] sm:$0xff] }
   0xc   :  { %269 = vmatprep.mubr.f32.mxu1 %v2590_v3  ;;  %1890 = vmatprep.subr.bf16.mxu0 %v2689_v29  ;;  %v364_v45 = vld [vmem:[%s3319_s2 + $0xa0] sm:$0xff]  ;;  %v362_v48 = vld [vmem:[%s3319_s2 + $0x90] sm:$0xff]  ;;  %v373_v52 = vld [vmem:[%s3319_s2 + $0xe8] sm:$0xff] }
   0xd   :  { %1831 = vmatmul.mubr.msk.f32.gmra.mrb[2].mxu0 %vm61_vm0, %v24_v33  ;;  %1922 = vmatprep.subr.bf16.mxu1 %v2705_v34  ;;  %v366_v49 = vld [vmem:[%s3319_s2 + $0xb0] sm:$0xff]  ;;  %v2756_v50 = vpack.c.bf16 %v364_v45, %v360_v44  ;;  %v371_v53 = vld [vmem:[%s3319_s2 + $0xd8] sm:$0xff]  ;;  %v368_v56 = vld [vmem:[%s3319_s2 + $0xc0] sm:$0xff]  ;;  %v2782_v58 = vpack.c.bf16 %v373_v52, %v369_v51 }
   0xe   :  { %1839 = vmatmul.mubr.msk.f32.gmra.mrb[2].mxu1 %vm61_vm0, %v24_v33  ;;  %1892 = vmatpush1.bf16.msra.mxu0 %v2707_v35  ;;  %v2769_v54 = vpack.c.bf16 %v366_v49, %v362_v48  ;;  %v375_v55 = vld [vmem:[%s3319_s2 + $0xf8] sm:$0xff]  ;;  %v372_v57 = vld [vmem:[%s3319_s2 + $0xe0] sm:$0xff]  ;;  %v370_v59 = vld [vmem:[%s3319_s2 + $0xd0] sm:$0xff] }
   0xf   :  { %1924 = vmatpush1.bf16.msra.mxu1 %v2717_v38  ;;  %162 = vmatprep.mubr.f32.mxu0 %v2590_v3  ;;  %v374_v60 = vld [vmem:[%s3319_s2 + $0xf0] sm:$0xff]  ;;  %v2792_v61 = vpack.c.bf16 %v375_v55, %v371_v53  ;;  %v377_v62 = vld [vmem:[%s3319_s2 + $0x108] sm:$0xff]  ;;  %v26_v0 = vld [vmem:[%s3318_s0 + $0x18] sm:$0xff]  ;;  %v2805_v1 = vpack.c.bf16 %v372_v57, %v368_v56 }
  0x10   :  { %275 = vmatprep.mubr.f32.mxu1 %v2590_v3  ;;  %1894 = vmatprep.subr.bf16.mxu0 %v2730_v42  ;;  %v381_v63 = vld [vmem:[%s3319_s2 + $0x128] sm:$0xff]  ;;  %v379_v2 = vld [vmem:[%s3319_s2 + $0x118] sm:$0xff]  ;;  %v2815_v5 = vpack.c.bf16 %v374_v60, %v370_v59  ;;  %v376_v6 = vld [vmem:[%s3319_s2 + $0x100] sm:$0xff] }
  0x11   :  { %1832 = vmatmul.mubr.msk.f32.gmra.mrb[4].mxu0 %vm61_vm0, %v25_v46  ;;  %1926 = vmatprep.subr.bf16.mxu1 %v2746_v47  ;;  %v383_v4 = vld [vmem:[%s3319_s2 + $0x138] sm:$0xff]  ;;  %v380_v7 = vld [vmem:[%s3319_s2 + $0x120] sm:$0xff]  ;;  %v2825_v8 = vpack.c.bf16 %v381_v63, %v377_v62  ;;  %v378_v9 = vld [vmem:[%s3319_s2 + $0x110] sm:$0xff] }
  0x12   :  { %1840 = vmatmul.mubr.msk.f32.gmra.mrb[4].mxu1 %vm61_vm0, %v25_v46  ;;  %1896 = vmatpush1.bf16.msra.mxu0 %v2756_v50  ;;  %v382_v10 = vld [vmem:[%s3319_s2 + $0x130] sm:$0xff]  ;;  %v2835_v11 = vpack.c.bf16 %v383_v4, %v379_v2  ;;  %v385_v12 = vld [vmem:[%s3319_s2 + $0x148] sm:$0xff]  ;;  %v27_v14 = vld [vmem:[%s3318_s0 + $0x20] sm:$0xff]  ;;  %v2848_v15 = vpack.c.bf16 %v380_v7, %v376_v6  ;;  %v41_v7 = vlaneseq }
  0x13   :  { %1928 = vmatpush1.bf16.msra.mxu1 %v2769_v54  ;;  %168 = vmatprep.mubr.f32.mxu0 %v2590_v3  ;;  %v389_v13 = vld [vmem:[%s3319_s2 + $0x168] sm:$0xff]  ;;  %v387_v16 = vld [vmem:[%s3319_s2 + $0x158] sm:$0xff]  ;;  %v2858_v19 = vpack.c.bf16 %v382_v10, %v378_v9  ;;  %v384_v20 = vld [vmem:[%s3319_s2 + $0x140] sm:$0xff] }
  0x14   :  { %281 = vmatprep.mubr.f32.mxu1 %v2590_v3  ;;  %1898 = vmatprep.subr.bf16.mxu0 %v2782_v58  ;;  %v391_v18 = vld [vmem:[%s3319_s2 + $0x178] sm:$0xff]  ;;  %v388_v23 = vld [vmem:[%s3319_s2 + $0x160] sm:$0xff]  ;;  %v2868_v24 = vpack.c.bf16 %v389_v13, %v385_v12  ;;  %v386_v26 = vld [vmem:[%s3319_s2 + $0x150] sm:$0xff]  ;;  %v42_v9 = vshrl.u32 %v41_v7, 7 }
  0x15   :  { %1833 = vmatmul.mubr.msk.f32.gmra.mrb[6].mxu0 %vm61_vm0, %v26_v0  ;;  %1930 = vmatprep.subr.bf16.mxu1 %v2792_v61  ;;  %v390_v27 = vld [vmem:[%s3319_s2 + $0x170] sm:$0xff]  ;;  %v2878_v28 = vpack.c.bf16 %v391_v18, %v387_v16  ;;  %v393_v30 = vld [vmem:[%s3319_s2 + $0x188] sm:$0xff]  ;;  %v2891_v33 = vpack.c.bf16 %v388_v23, %v384_v20  ;;  %v395_v36 = vld [vmem:[%s3319_s2 + $0x198] sm:$0xff] }
  0x16   :  { %1841 = vmatmul.mubr.msk.f32.gmra.mrb[6].mxu1 %vm61_vm0, %v26_v0  ;;  %1900 = vmatpush1.bf16.msra.mxu0 %v2805_v1  ;;  %v397_v31 = vld [vmem:[%s3319_s2 + $0x1a8] sm:$0xff]  ;;  %v399_v37 = vld [vmem:[%s3319_s2 + $0x1b8] sm:$0xff]  ;;  %v2901_v39 = vpack.c.bf16 %v390_v27, %v386_v26  ;;  %v392_v40 = vld [vmem:[%s3319_s2 + $0x180] sm:$0xff]  ;;  %v43_v10 = vsub.s32 0, %v42_v9  ;;  %v47_v13 = vsub.s32 1, %v42_v9  ;;  %v51_v20 = vsub.s32 2, %v42_v9 }
  0x17   :  { %1932 = vmatpush1.bf16.msra.mxu1 %v2815_v5  ;;  %174 = vmatprep.mubr.f32.mxu0 %v2590_v3  ;;  %v28_v32 = vld [vmem:[%s3318_s0 + $0x28] sm:$0xff]  ;;  %v396_v41 = vld [vmem:[%s3319_s2 + $0x1a0] sm:$0xff]  ;;  %v2911_v43 = vpack.c.bf16 %v397_v31, %v393_v30  ;;  %v394_v44 = vld [vmem:[%s3319_s2 + $0x190] sm:$0xff]  ;;  %v2921_v46 = vpack.c.bf16 %v399_v37, %v395_v36 }
  0x18   :  { %287 = vmatprep.mubr.f32.mxu1 %v2590_v3  ;;  %1902 = vmatprep.subr.bf16.mxu0 %v2825_v8  ;;  %v398_v45 = vld [vmem:[%s3319_s2 + $0x1b0] sm:$0xff]  ;;  %v401_v48 = vld [vmem:[%s3319_s2 + $0x1c8] sm:$0xff]  ;;  %v2934_v52 = vpack.c.bf16 %v396_v41, %v392_v40  ;;  %v403_v53 = vld [vmem:[%s3319_s2 + $0x1d8] sm:$0xff]  ;;  %v55_v40 = vsub.s32 3, %v42_v9 }
  0x19   :  { %1834 = vmatmul.mubr.msk.f32.gmra.mrb[8].mxu0 %vm61_vm0, %v27_v14  ;;  %1934 = vmatprep.subr.bf16.mxu1 %v2835_v11  ;;  %v405_v49 = vld [vmem:[%s3319_s2 + $0x1e8] sm:$0xff]  ;;  %v29_v51 = vld [vmem:[%s3318_s0 + $0x30] sm:$0xff]  ;;  %v407_v55 = vld [vmem:[%s3319_s2 + $0x1f8] sm:$0xff]  ;;  %v2944_v56 = vpack.c.bf16 %v398_v45, %v394_v44 }
  0x1a   :  { %1842 = vmatmul.mubr.msk.f32.gmra.mrb[8].mxu1 %vm61_vm0, %v27_v14  ;;  %1904 = vmatpush1.bf16.msra.mxu0 %v2848_v15  ;;  %v400_v57 = vld [vmem:[%s3319_s2 + $0x1c0] sm:$0xff]  ;;  %v2954_v60 = vpack.c.bf16 %v405_v49, %v401_v48  ;;  %v402_v62 = vld [vmem:[%s3319_s2 + $0x1d0] sm:$0xff]  ;;  %v2964_v0 = vpack.c.bf16 %v407_v55, %v403_v53  ;;  %v30_v2 = vld [vmem:[%s3318_s0 + $0x38] sm:$0xff] }
  0x1b   :  { %1936 = vmatpush1.bf16.msra.mxu1 %v2858_v19  ;;  %180 = vmatprep.mubr.f32.mxu0 %v2590_v3  ;;  %v404_v59 = vld [vmem:[%s3319_s2 + $0x1e0] sm:$0xff]  ;;  %v406_v63 = vld [vmem:[%s3319_s2 + $0x1f0] sm:$0xff] }
  0x1c   :  { %293 = vmatprep.mubr.f32.mxu1 %v2590_v3  ;;  %1906 = vmatprep.subr.bf16.mxu0 %v2868_v24  ;;  %v2971_v4 = vpack.c.bf16 %v404_v59, %v400_v57  ;;  %v2975_v6 = vpack.c.bf16 %v406_v63, %v402_v62  ;;  %v39_v12 = vld [vmem:[%s3320_s3] sm:$0xf] }
  0x1d   :  { %1835 = vmatmul.mubr.msk.f32.gmra.mrb[10].mxu0 %vm61_vm0, %v28_v32  ;;  %1938 = vmatprep.subr.bf16.mxu1 %v2878_v28  ;;  %v3027_v14 = vrot.slane %v39_v12, %v43_v10  ;;  %v3029_v16 = vrot.slane %v39_v12, %v47_v13  ;;  %v3033_v36 = vrot.slane %v39_v12, %v51_v20 }
  0x1e   :  { %1843 = vmatmul.mubr.msk.f32.gmra.mrb[10].mxu1 %vm61_vm0, %v28_v32  ;;  %1908 = vmatpush1.bf16.msra.mxu0 %v2891_v33  ;;  %v3036_v44 = vrot.slane %v39_v12, %v55_v40 }
  0x1f   :  { %1940 = vmatpush1.bf16.msra.mxu1 %v2901_v39  ;;  %186 = vmatprep.mubr.f32.mxu0 %v2590_v3 }
  0x20   :  { %299 = vmatprep.mubr.f32.mxu1 %v2590_v3  ;;  %1910 = vmatprep.subr.bf16.mxu0 %v2911_v43 }
  0x21   :  { %1836 = vmatmul.mubr.msk.f32.gmra.mrb[12].mxu0 %vm61_vm0, %v29_v51  ;;  %1942 = vmatprep.subr.bf16.mxu1 %v2921_v46 }
  0x22   :  { %1844 = vmatmul.mubr.msk.f32.gmra.mrb[12].mxu1 %vm61_vm0, %v29_v51  ;;  %1912 = vmatpush1.bf16.msra.mxu0 %v2934_v52 }
  0x23   :  { %1944 = vmatpush1.bf16.msra.mxu1 %v2944_v56  ;;  %192 = vmatprep.mubr.f32.mxu0 %v2590_v3 }
  0x24   :  { %305 = vmatprep.mubr.f32.mxu1 %v2590_v3  ;;  %1914 = vmatprep.subr.bf16.mxu0 %v2954_v60 }
  0x25   :  { %1837 = vmatmul.mubr.msk.f32.gmra.mrb[14].mxu0 %vm61_vm0, %v30_v2  ;;  %1946 = vmatprep.subr.bf16.mxu1 %v2964_v0 }
  0x26   :  { %1845 = vmatmul.mubr.msk.f32.gmra.mrb[14].mxu1 %vm61_vm0, %v30_v2  ;;  %1916 = vmatpush1.bf16.msra.mxu0 %v2971_v4 }
  0x27   :  { %1948 = vmatpush1.bf16.msra.mxu1 %v2975_v6  ;;  %478 = vmatprep.mubr.f32.mxu0 %v2590_v3 }
  0x28   :  { %549 = vmatprep.mubr.f32.mxu1 %v2590_v3  ;;  %1950 = vmatprep.subr.bf16.mxu0 %v2654_v17 }
  0x29   :  { %479 = vmatmul.mubr.f32.vlgmr.msra.gmra.mrb[0].mxu0 %v2590_v3  ;;  %1982 = vmatprep.subr.bf16.mxu1 %v2665_v21 }
  0x2a   :  { %550 = vmatmul.mubr.f32.vlgmr.msra.gmra.mrb[0].mxu1 %v2590_v3  ;;  %1952 = vmatpush1.bf16.msra.mxu0 %v2667_v22 }
  0x2b   :  { %1984 = vmatpush1.bf16.msra.mxu1 %v2676_v25  ;;  %1954 = vmatprep.subr.bf16.mxu0 %v2689_v29 }
  0x2c   :  { %1986 = vmatprep.subr.bf16.mxu1 %v2705_v34  ;;  %654 = vmatprep.mubr.f32.mxu0 %v2590_v3 }
  0x2d   :  { %725 = vmatprep.mubr.f32.mxu1 %v2590_v3 }
  0x2e   :  { %1956 = vmatpush1.bf16.msra.mxu0 %v2707_v35 }
  0x2f   :  { %1988 = vmatpush1.bf16.msra.mxu1 %v2717_v38  ;;  %1958 = vmatprep.subr.bf16.mxu0 %v2730_v42 }
  0x30   :  { %1990 = vmatprep.subr.bf16.mxu1 %v2746_v47 }
  0x32   :  { %1960 = vmatpush1.bf16.msra.mxu0 %v2756_v50 }
  0x33   :  { %1992 = vmatpush1.bf16.msra.mxu1 %v2769_v54  ;;  %1962 = vmatprep.subr.bf16.mxu0 %v2782_v58 }
  0x34   :  { %1994 = vmatprep.subr.bf16.mxu1 %v2792_v61 }
  0x36   :  { %1964 = vmatpush1.bf16.msra.mxu0 %v2805_v1 }
  0x37   :  { %1996 = vmatpush1.bf16.msra.mxu1 %v2815_v5  ;;  %1966 = vmatprep.subr.bf16.mxu0 %v2825_v8 }
  0x38   :  { %1998 = vmatprep.subr.bf16.mxu1 %v2835_v11 }
  0x3a   :  { %1968 = vmatpush1.bf16.msra.mxu0 %v2848_v15 }
  0x3b   :  { %2000 = vmatpush1.bf16.msra.mxu1 %v2858_v19  ;;  %1970 = vmatprep.subr.bf16.mxu0 %v2868_v24 }
  0x3c   :  { %2002 = vmatprep.subr.bf16.mxu1 %v2878_v28 }
  0x3e   :  { %1972 = vmatpush1.bf16.msra.mxu0 %v2891_v33 }
  0x3f   :  { %2004 = vmatpush1.bf16.msra.mxu1 %v2901_v39  ;;  %1974 = vmatprep.subr.bf16.mxu0 %v2911_v43 }
  0x40   :  { %2006 = vmatprep.subr.bf16.mxu1 %v2921_v46 }
  0x42   :  { %1976 = vmatpush1.bf16.msra.mxu0 %v2934_v52 }
  0x43   :  { %2008 = vmatpush1.bf16.msra.mxu1 %v2944_v56  ;;  %1978 = vmatprep.subr.bf16.mxu0 %v2954_v60 }
  0x44   :  { %2010 = vmatprep.subr.bf16.mxu1 %v2964_v0 }
  0x46   :  { %1980 = vmatpush1.bf16.msra.mxu0 %v2971_v4 }
  0x47   :  { %2012 = vmatpush1.bf16.msra.mxu1 %v2975_v6  ;;  %2014 = vmatprep.subr.bf16.mxu0 %v2654_v17 }
  0x48   :  { %2046 = vmatprep.subr.bf16.mxu1 %v2665_v21 }
  0xfc   :  { %v480_v18 = vpop.f32.mrb[0].mxu0 }
  0xfd   :  { %v2397_v23 = vadd.f32 %v480_v18, %v3027_v14  ;;  %v551_v26 = vpop.f32.mrb[0].mxu1  ;;  %v482_v27 = vpop.f32.mrb[1].mxu0 }
  0xfe   :  { %v2398_v30 = vadd.f32 %v482_v27, %v3029_v16  ;;  %v553_v31 = vpop.f32.mrb[1].mxu1  ;;  %v2413_v41 = vadd.f32 %v551_v26, %v3033_v36 }
  0xff   :  { %v1846_v32 = vmul.f32 -1.442695, %v2397_v23  ;;  %v2414_v48 = vadd.f32 %v553_v31, %v3036_v44 }
 0x100   :  { %v1847_v37 = vmul.f32 -1.442695, %v2398_v30  ;;  %v1848_v45 = vmul.f32 -1.442695, %v2413_v41 }
 0x101   :  { %2462 = vpow2.f32 %v1846_v32 }
 0x102   :  { %2464 = vpow2.f32 %v1847_v37 }
 0x103   :  { %2466 = vpow2.f32 %v1848_v45 }
 0x104   :  { %2468 = vtanh.f32 %v2414_v48 }
 0x10b   :  { %v2463_v49 = vpop.eup %2462 }
 0x10c   :  { %v569_v51 = vadd.f32 1.0, %v2463_v49  ;;  %v2465_v53 = vpop.eup %2464 }
 0x10d   :  { %v570_v55 = vadd.f32 1.0, %v2465_v53  ;;  %v2467_v57 = vpop.eup %2466 }
 0x10e   :  { %2470 = vrcp.f32 %v569_v51  ;;  %v2469_v59 = vpop.eup %2468  ;;  %v571_v7 = vadd.f32 1.0, %v2467_v57 }
 0x10f   :  { %2472 = vrcp.f32 %v570_v55 }
 0x110   :  { %2474 = vrcp.f32 %v571_v7 }
 0x118   :  { %v2471_v62 = vpop.eup %2470 }
 0x119   :  { %v580_v63 = vmul.f32 %v2471_v62, %v2469_v59  ;;  %v2473_v2 = vpop.eup %2472 }
 0x11a   :  { %v579_v9 = vmul.f32 0.0, %v2473_v2  ;;  %v2475_v12 = vpop.eup %2474 }
 0x11c   :  { %v3039_v10 = vadd.f32 %v580_v63, %v579_v9 }
 0x11e   :  { %2476 = vtanh.f32 %v3039_v10 }
 0x128   :  { %v2477_v13 = vpop.eup %2476 }
 0x129   :  { %v583_v18 = vmul.f32 %v2477_v13, %v2475_v12 }
 0x12b   :  { %584 = vst [vmem:[%s3321_s4] sm:$0xff] %v583_v18  ;;  %655 = vmatmul.mubr.f32.vlgmr.msra.gmra.mrb[2].mxu0 %v583_v18  ;;  %726 = vmatmul.mubr.f32.vlgmr.msra.gmra.mrb[2].mxu1 %v583_v18 }
 0x12c   :  { %2016 = vmatpush1.bf16.msra.mxu0 %v2667_v22  ;;  %2048 = vmatpush1.bf16.msra.mxu1 %v2676_v25 }
 0x12d   :  { %2018 = vmatprep.subr.bf16.mxu0 %v2689_v29  ;;  %2050 = vmatprep.subr.bf16.mxu1 %v2705_v34 }
 0x12e   :  { %831 = vmatprep.mubr.f32.mxu0 %v2590_v3  ;;  %902 = vmatprep.mubr.f32.mxu1 %v2590_v3 }
 0x130   :  { %2020 = vmatpush1.bf16.msra.mxu0 %v2707_v35  ;;  %2052 = vmatpush1.bf16.msra.mxu1 %v2717_v38 }
 0x131   :  { %2022 = vmatprep.subr.bf16.mxu0 %v2730_v42  ;;  %2054 = vmatprep.subr.bf16.mxu1 %v2746_v47 }
 0x134   :  { %2024 = vmatpush1.bf16.msra.mxu0 %v2756_v50  ;;  %2056 = vmatpush1.bf16.msra.mxu1 %v2769_v54 }
 0x135   :  { %2026 = vmatprep.subr.bf16.mxu0 %v2782_v58  ;;  %2058 = vmatprep.subr.bf16.mxu1 %v2792_v61 }
 0x138   :  { %2028 = vmatpush1.bf16.msra.mxu0 %v2805_v1  ;;  %2060 = vmatpush1.bf16.msra.mxu1 %v2815_v5 }
 0x139   :  { %2030 = vmatprep.subr.bf16.mxu0 %v2825_v8  ;;  %2062 = vmatprep.subr.bf16.mxu1 %v2835_v11 }
 0x13c   :  { %2032 = vmatpush1.bf16.msra.mxu0 %v2848_v15  ;;  %2064 = vmatpush1.bf16.msra.mxu1 %v2858_v19 }
 0x13d   :  { %2034 = vmatprep.subr.bf16.mxu0 %v2868_v24  ;;  %2066 = vmatprep.subr.bf16.mxu1 %v2878_v28 }
 0x140   :  { %2036 = vmatpush1.bf16.msra.mxu0 %v2891_v33  ;;  %2068 = vmatpush1.bf16.msra.mxu1 %v2901_v39 }
 0x141   :  { %2038 = vmatprep.subr.bf16.mxu0 %v2911_v43  ;;  %2070 = vmatprep.subr.bf16.mxu1 %v2921_v46 }
 0x144   :  { %2040 = vmatpush1.bf16.msra.mxu0 %v2934_v52  ;;  %2072 = vmatpush1.bf16.msra.mxu1 %v2944_v56 }
 0x145   :  { %2042 = vmatprep.subr.bf16.mxu0 %v2954_v60  ;;  %2074 = vmatprep.subr.bf16.mxu1 %v2964_v0 }
 0x148   :  { %2044 = vmatpush1.bf16.msra.mxu0 %v2971_v4  ;;  %2076 = vmatpush1.bf16.msra.mxu1 %v2975_v6 }
 0x149   :  { %2078 = vmatprep.subr.bf16.mxu0 %v2654_v17  ;;  %2110 = vmatprep.subr.bf16.mxu1 %v2665_v21 }
 0x1fe   :  { %v656_v20 = vpop.f32.mrb[2].mxu0  ;;  %v727_v23 = vpop.f32.mrb[2].mxu1 }
 0x1ff   :  { %v2399_v26 = vadd.f32 %v656_v20, %v3027_v14  ;;  %v658_v27 = vpop.f32.mrb[3].mxu0  ;;  %v729_v30 = vpop.f32.mrb[3].mxu1  ;;  %v2415_v40 = vadd.f32 %v727_v23, %v3033_v36 }
 0x200   :  { %v2400_v31 = vadd.f32 %v658_v27, %v3029_v16  ;;  %v2416_v41 = vadd.f32 %v729_v30, %v3036_v44 }
 0x201   :  { %v1849_v32 = vmul.f32 -1.442695, %v2399_v26  ;;  %v1851_v45 = vmul.f32 -1.442695, %v2415_v40 }
 0x202   :  { %v1850_v37 = vmul.f32 -1.442695, %v2400_v31 }
 0x203   :  { %2478 = vpow2.f32 %v1849_v32 }
 0x204   :  { %2480 = vpow2.f32 %v1850_v37 }
 0x205   :  { %2482 = vtanh.f32 %v2416_v41 }
 0x206   :  { %2484 = vpow2.f32 %v1851_v45 }
 0x20d   :  { %v2479_v48 = vpop.eup %2478 }
 0x20e   :  { %v745_v49 = vadd.f32 1.0, %v2479_v48  ;;  %v2481_v51 = vpop.eup %2480 }
 0x20f   :  { %v746_v53 = vadd.f32 1.0, %v2481_v51  ;;  %v2483_v55 = vpop.eup %2482 }
 0x210   :  { %2486 = vrcp.f32 %v745_v49  ;;  %v2485_v57 = vpop.eup %2484 }
 0x211   :  { %2488 = vrcp.f32 %v746_v53  ;;  %v747_v2 = vadd.f32 1.0, %v2485_v57 }
 0x213   :  { %2490 = vrcp.f32 %v747_v2 }
 0x21a   :  { %v2487_v59 = vpop.eup %2486 }
 0x21b   :  { %v756_v62 = vmul.f32 %v2487_v59, %v2483_v55  ;;  %v2489_v63 = vpop.eup %2488 }
 0x21c   :  { %v755_v7 = vmul.f32 %v2489_v63, %v3039_v10 }
 0x21d   :  { %v2491_v12 = vpop.eup %2490 }
 0x21e   :  { %v3084_v9 = vadd.f32 %v756_v62, %v755_v7 }
 0x220   :  { %2492 = vtanh.f32 %v3084_v9 }
 0x22a   :  { %v2493_v13 = vpop.eup %2492 }
 0x22b   :  { %v759_v18 = vmul.f32 %v2493_v13, %v2491_v12 }
 0x22d   :  { %1852 = vst [vmem:[%s3321_s4 + $0x8] sm:$0xff] %v759_v18  ;;  %832 = vmatmul.mubr.f32.vlgmr.msra.gmra.mrb[4].mxu0 %v759_v18  ;;  %903 = vmatmul.mubr.f32.vlgmr.msra.gmra.mrb[4].mxu1 %v759_v18 }
 0x22e   :  { %2080 = vmatpush1.bf16.msra.mxu0 %v2667_v22  ;;  %2112 = vmatpush1.bf16.msra.mxu1 %v2676_v25 }
 0x22f   :  { %2082 = vmatprep.subr.bf16.mxu0 %v2689_v29  ;;  %2114 = vmatprep.subr.bf16.mxu1 %v2705_v34 }
 0x230   :  { %1008 = vmatprep.mubr.f32.mxu0 %v2590_v3  ;;  %1079 = vmatprep.mubr.f32.mxu1 %v2590_v3 }
 0x232   :  { %2084 = vmatpush1.bf16.msra.mxu0 %v2707_v35  ;;  %2116 = vmatpush1.bf16.msra.mxu1 %v2717_v38 }
 0x233   :  { %2086 = vmatprep.subr.bf16.mxu0 %v2730_v42  ;;  %2118 = vmatprep.subr.bf16.mxu1 %v2746_v47 }
 0x236   :  { %2088 = vmatpush1.bf16.msra.mxu0 %v2756_v50  ;;  %2120 = vmatpush1.bf16.msra.mxu1 %v2769_v54 }
 0x237   :  { %2090 = vmatprep.subr.bf16.mxu0 %v2782_v58  ;;  %2122 = vmatprep.subr.bf16.mxu1 %v2792_v61 }
 0x23a   :  { %2092 = vmatpush1.bf16.msra.mxu0 %v2805_v1  ;;  %2124 = vmatpush1.bf16.msra.mxu1 %v2815_v5 }
 0x23b   :  { %2094 = vmatprep.subr.bf16.mxu0 %v2825_v8  ;;  %2126 = vmatprep.subr.bf16.mxu1 %v2835_v11 }
 0x23e   :  { %2096 = vmatpush1.bf16.msra.mxu0 %v2848_v15  ;;  %2128 = vmatpush1.bf16.msra.mxu1 %v2858_v19 }
 0x23f   :  { %2098 = vmatprep.subr.bf16.mxu0 %v2868_v24  ;;  %2130 = vmatprep.subr.bf16.mxu1 %v2878_v28 }
 0x242   :  { %2100 = vmatpush1.bf16.msra.mxu0 %v2891_v33  ;;  %2132 = vmatpush1.bf16.msra.mxu1 %v2901_v39 }
 0x243   :  { %2102 = vmatprep.subr.bf16.mxu0 %v2911_v43  ;;  %2134 = vmatprep.subr.bf16.mxu1 %v2921_v46 }
 0x246   :  { %2104 = vmatpush1.bf16.msra.mxu0 %v2934_v52  ;;  %2136 = vmatpush1.bf16.msra.mxu1 %v2944_v56 }
 0x247   :  { %2106 = vmatprep.subr.bf16.mxu0 %v2954_v60  ;;  %2138 = vmatprep.subr.bf16.mxu1 %v2964_v0 }
 0x24a   :  { %2108 = vmatpush1.bf16.msra.mxu0 %v2971_v4  ;;  %2140 = vmatpush1.bf16.msra.mxu1 %v2975_v6 }
 0x24b   :  { %2142 = vmatprep.subr.bf16.mxu0 %v2654_v17  ;;  %2174 = vmatprep.subr.bf16.mxu1 %v2665_v21 }
 0x300   :  { %v833_v10 = vpop.f32.mrb[4].mxu0  ;;  %v904_v20 = vpop.f32.mrb[4].mxu1 }
 0x301   :  { %v2401_v23 = vadd.f32 %v833_v10, %v3027_v14  ;;  %v835_v26 = vpop.f32.mrb[5].mxu0  ;;  %v906_v27 = vpop.f32.mrb[5].mxu1  ;;  %v2417_v37 = vadd.f32 %v904_v20, %v3033_v36 }
 0x302   :  { %v2402_v30 = vadd.f32 %v835_v26, %v3029_v16  ;;  %v2418_v40 = vadd.f32 %v906_v27, %v3036_v44 }
 0x303   :  { %v1853_v31 = vmul.f32 -1.442695, %v2401_v23  ;;  %v1855_v41 = vmul.f32 -1.442695, %v2417_v37 }
 0x304   :  { %v1854_v32 = vmul.f32 -1.442695, %v2402_v30 }
 0x305   :  { %2494 = vpow2.f32 %v1853_v31 }
 0x306   :  { %2496 = vpow2.f32 %v1854_v32 }
 0x307   :  { %2498 = vtanh.f32 %v2418_v40 }
 0x308   :  { %2500 = vpow2.f32 %v1855_v41 }
 0x30f   :  { %v2495_v45 = vpop.eup %2494 }
 0x310   :  { %v922_v48 = vadd.f32 1.0, %v2495_v45  ;;  %v2497_v49 = vpop.eup %2496 }
 0x311   :  { %v923_v51 = vadd.f32 1.0, %v2497_v49  ;;  %v2499_v53 = vpop.eup %2498 }
 0x312   :  { %2502 = vrcp.f32 %v922_v48  ;;  %v2501_v55 = vpop.eup %2500 }
 0x313   :  { %2504 = vrcp.f32 %v923_v51  ;;  %v924_v63 = vadd.f32 1.0, %v2501_v55 }
 0x315   :  { %2506 = vrcp.f32 %v924_v63 }
 0x31c   :  { %v2503_v57 = vpop.eup %2502 }
 0x31d   :  { %v933_v59 = vmul.f32 %v2503_v57, %v2499_v53  ;;  %v2505_v62 = vpop.eup %2504 }
 0x31e   :  { %v932_v2 = vmul.f32 %v2505_v62, %v3084_v9 }
 0x31f   :  { %v2507_v12 = vpop.eup %2506 }
 0x320   :  { %v3129_v7 = vadd.f32 %v933_v59, %v932_v2 }
 0x322   :  { %2508 = vtanh.f32 %v3129_v7 }
 0x32c   :  { %v2509_v13 = vpop.eup %2508 }
 0x32d   :  { %v936_v18 = vmul.f32 %v2509_v13, %v2507_v12 }
 0x32f   :  { %1856 = vst [vmem:[%s3321_s4 + $0x10] sm:$0xff] %v936_v18  ;;  %1009 = vmatmul.mubr.f32.vlgmr.msra.gmra.mrb[6].mxu0 %v936_v18  ;;  %1080 = vmatmul.mubr.f32.vlgmr.msra.gmra.mrb[6].mxu1 %v936_v18 }
 0x330   :  { %2144 = vmatpush1.bf16.msra.mxu0 %v2667_v22  ;;  %2176 = vmatpush1.bf16.msra.mxu1 %v2676_v25 }
 0x331   :  { %2146 = vmatprep.subr.bf16.mxu0 %v2689_v29  ;;  %2178 = vmatprep.subr.bf16.mxu1 %v2705_v34 }
 0x332   :  { %1185 = vmatprep.mubr.f32.mxu0 %v2590_v3  ;;  %1256 = vmatprep.mubr.f32.mxu1 %v2590_v3 }
 0x334   :  { %2148 = vmatpush1.bf16.msra.mxu0 %v2707_v35  ;;  %2180 = vmatpush1.bf16.msra.mxu1 %v2717_v38 }
 0x335   :  { %2150 = vmatprep.subr.bf16.mxu0 %v2730_v42  ;;  %2182 = vmatprep.subr.bf16.mxu1 %v2746_v47 }
 0x338   :  { %2152 = vmatpush1.bf16.msra.mxu0 %v2756_v50  ;;  %2184 = vmatpush1.bf16.msra.mxu1 %v2769_v54 }
 0x339   :  { %2154 = vmatprep.subr.bf16.mxu0 %v2782_v58  ;;  %2186 = vmatprep.subr.bf16.mxu1 %v2792_v61 }
 0x33c   :  { %2156 = vmatpush1.bf16.msra.mxu0 %v2805_v1  ;;  %2188 = vmatpush1.bf16.msra.mxu1 %v2815_v5 }
 0x33d   :  { %2158 = vmatprep.subr.bf16.mxu0 %v2825_v8  ;;  %2190 = vmatprep.subr.bf16.mxu1 %v2835_v11 }
 0x340   :  { %2160 = vmatpush1.bf16.msra.mxu0 %v2848_v15  ;;  %2192 = vmatpush1.bf16.msra.mxu1 %v2858_v19 }
 0x341   :  { %2162 = vmatprep.subr.bf16.mxu0 %v2868_v24  ;;  %2194 = vmatprep.subr.bf16.mxu1 %v2878_v28 }
 0x344   :  { %2164 = vmatpush1.bf16.msra.mxu0 %v2891_v33  ;;  %2196 = vmatpush1.bf16.msra.mxu1 %v2901_v39 }
 0x345   :  { %2166 = vmatprep.subr.bf16.mxu0 %v2911_v43  ;;  %2198 = vmatprep.subr.bf16.mxu1 %v2921_v46 }
 0x348   :  { %2168 = vmatpush1.bf16.msra.mxu0 %v2934_v52  ;;  %2200 = vmatpush1.bf16.msra.mxu1 %v2944_v56 }
 0x349   :  { %2170 = vmatprep.subr.bf16.mxu0 %v2954_v60  ;;  %2202 = vmatprep.subr.bf16.mxu1 %v2964_v0 }
 0x34c   :  { %2172 = vmatpush1.bf16.msra.mxu0 %v2971_v4  ;;  %2204 = vmatpush1.bf16.msra.mxu1 %v2975_v6 }
 0x34d   :  { %2206 = vmatprep.subr.bf16.mxu0 %v2654_v17  ;;  %2238 = vmatprep.subr.bf16.mxu1 %v2665_v21 }
 0x402   :  { %v1010_v9 = vpop.f32.mrb[6].mxu0  ;;  %v1081_v10 = vpop.f32.mrb[6].mxu1 }
 0x403   :  { %v2403_v20 = vadd.f32 %v1010_v9, %v3027_v14  ;;  %v1012_v23 = vpop.f32.mrb[7].mxu0  ;;  %v1083_v26 = vpop.f32.mrb[7].mxu1  ;;  %v2419_v32 = vadd.f32 %v1081_v10, %v3033_v36 }
 0x404   :  { %v2404_v27 = vadd.f32 %v1012_v23, %v3029_v16  ;;  %v2420_v37 = vadd.f32 %v1083_v26, %v3036_v44 }
 0x405   :  { %v1857_v30 = vmul.f32 -1.442695, %v2403_v20  ;;  %v1859_v40 = vmul.f32 -1.442695, %v2419_v32 }
 0x406   :  { %v1858_v31 = vmul.f32 -1.442695, %v2404_v27 }
 0x407   :  { %2510 = vpow2.f32 %v1857_v30 }
 0x408   :  { %2512 = vpow2.f32 %v1858_v31 }
 0x409   :  { %2514 = vtanh.f32 %v2420_v37 }
 0x40a   :  { %2516 = vpow2.f32 %v1859_v40 }
 0x411   :  { %v2511_v41 = vpop.eup %2510 }
 0x412   :  { %v1099_v45 = vadd.f32 1.0, %v2511_v41  ;;  %v2513_v48 = vpop.eup %2512 }
 0x413   :  { %v1100_v49 = vadd.f32 1.0, %v2513_v48  ;;  %v2515_v51 = vpop.eup %2514 }
 0x414   :  { %2518 = vrcp.f32 %v1099_v45  ;;  %v2517_v53 = vpop.eup %2516 }
 0x415   :  { %2520 = vrcp.f32 %v1100_v49  ;;  %v1101_v62 = vadd.f32 1.0, %v2517_v53 }
 0x417   :  { %2522 = vrcp.f32 %v1101_v62 }
 0x41e   :  { %v2519_v55 = vpop.eup %2518 }
 0x41f   :  { %v1110_v57 = vmul.f32 %v2519_v55, %v2515_v51  ;;  %v2521_v59 = vpop.eup %2520 }
 0x420   :  { %v1109_v63 = vmul.f32 %v2521_v59, %v3129_v7 }
 0x421   :  { %v2523_v12 = vpop.eup %2522 }
 0x422   :  { %v3174_v2 = vadd.f32 %v1110_v57, %v1109_v63 }
 0x424   :  { %2524 = vtanh.f32 %v3174_v2 }
 0x42e   :  { %v2525_v13 = vpop.eup %2524 }
 0x42f   :  { %v1113_v18 = vmul.f32 %v2525_v13, %v2523_v12 }
 0x431   :  { %1860 = vst [vmem:[%s3321_s4 + $0x18] sm:$0xff] %v1113_v18  ;;  %1186 = vmatmul.mubr.f32.vlgmr.msra.gmra.mrb[8].mxu0 %v1113_v18  ;;  %1257 = vmatmul.mubr.f32.vlgmr.msra.gmra.mrb[8].mxu1 %v1113_v18 }
 0x432   :  { %2208 = vmatpush1.bf16.msra.mxu0 %v2667_v22  ;;  %2240 = vmatpush1.bf16.msra.mxu1 %v2676_v25 }
 0x433   :  { %2210 = vmatprep.subr.bf16.mxu0 %v2689_v29  ;;  %2242 = vmatprep.subr.bf16.mxu1 %v2705_v34 }
 0x434   :  { %1362 = vmatprep.mubr.f32.mxu0 %v2590_v3  ;;  %1433 = vmatprep.mubr.f32.mxu1 %v2590_v3 }
 0x436   :  { %2212 = vmatpush1.bf16.msra.mxu0 %v2707_v35  ;;  %2244 = vmatpush1.bf16.msra.mxu1 %v2717_v38 }
 0x437   :  { %2214 = vmatprep.subr.bf16.mxu0 %v2730_v42  ;;  %2246 = vmatprep.subr.bf16.mxu1 %v2746_v47 }
 0x43a   :  { %2216 = vmatpush1.bf16.msra.mxu0 %v2756_v50  ;;  %2248 = vmatpush1.bf16.msra.mxu1 %v2769_v54 }
 0x43b   :  { %2218 = vmatprep.subr.bf16.mxu0 %v2782_v58  ;;  %2250 = vmatprep.subr.bf16.mxu1 %v2792_v61 }
 0x43e   :  { %2220 = vmatpush1.bf16.msra.mxu0 %v2805_v1  ;;  %2252 = vmatpush1.bf16.msra.mxu1 %v2815_v5 }
 0x43f   :  { %2222 = vmatprep.subr.bf16.mxu0 %v2825_v8  ;;  %2254 = vmatprep.subr.bf16.mxu1 %v2835_v11 }
 0x442   :  { %2224 = vmatpush1.bf16.msra.mxu0 %v2848_v15  ;;  %2256 = vmatpush1.bf16.msra.mxu1 %v2858_v19 }
 0x443   :  { %2226 = vmatprep.subr.bf16.mxu0 %v2868_v24  ;;  %2258 = vmatprep.subr.bf16.mxu1 %v2878_v28 }
 0x446   :  { %2228 = vmatpush1.bf16.msra.mxu0 %v2891_v33  ;;  %2260 = vmatpush1.bf16.msra.mxu1 %v2901_v39 }
 0x447   :  { %2230 = vmatprep.subr.bf16.mxu0 %v2911_v43  ;;  %2262 = vmatprep.subr.bf16.mxu1 %v2921_v46 }
 0x44a   :  { %2232 = vmatpush1.bf16.msra.mxu0 %v2934_v52  ;;  %2264 = vmatpush1.bf16.msra.mxu1 %v2944_v56 }
 0x44b   :  { %2234 = vmatprep.subr.bf16.mxu0 %v2954_v60  ;;  %2266 = vmatprep.subr.bf16.mxu1 %v2964_v0 }
 0x44e   :  { %2236 = vmatpush1.bf16.msra.mxu0 %v2971_v4  ;;  %2268 = vmatpush1.bf16.msra.mxu1 %v2975_v6 }
 0x44f   :  { %2270 = vmatprep.subr.bf16.mxu0 %v2654_v17  ;;  %2302 = vmatprep.subr.bf16.mxu1 %v2665_v21 }
 0x504   :  { %v1187_v7 = vpop.f32.mrb[8].mxu0  ;;  %v1258_v9 = vpop.f32.mrb[8].mxu1 }
 0x505   :  { %v2405_v10 = vadd.f32 %v1187_v7, %v3027_v14  ;;  %v1189_v20 = vpop.f32.mrb[9].mxu0  ;;  %v1260_v23 = vpop.f32.mrb[9].mxu1  ;;  %v2421_v31 = vadd.f32 %v1258_v9, %v3033_v36 }
 0x506   :  { %v2406_v26 = vadd.f32 %v1189_v20, %v3029_v16  ;;  %v2422_v32 = vadd.f32 %v1260_v23, %v3036_v44 }
 0x507   :  { %v1861_v27 = vmul.f32 -1.442695, %v2405_v10  ;;  %v1863_v37 = vmul.f32 -1.442695, %v2421_v31 }
 0x508   :  { %v1862_v30 = vmul.f32 -1.442695, %v2406_v26 }
 0x509   :  { %2526 = vpow2.f32 %v1861_v27 }
 0x50a   :  { %2528 = vpow2.f32 %v1862_v30 }
 0x50b   :  { %2530 = vtanh.f32 %v2422_v32 }
 0x50c   :  { %2532 = vpow2.f32 %v1863_v37 }
 0x513   :  { %v2527_v40 = vpop.eup %2526 }
 0x514   :  { %v1276_v41 = vadd.f32 1.0, %v2527_v40  ;;  %v2529_v45 = vpop.eup %2528 }
 0x515   :  { %v1277_v48 = vadd.f32 1.0, %v2529_v45  ;;  %v2531_v49 = vpop.eup %2530 }
 0x516   :  { %2534 = vrcp.f32 %v1276_v41  ;;  %v2533_v51 = vpop.eup %2532 }
 0x517   :  { %2536 = vrcp.f32 %v1277_v48  ;;  %v1278_v59 = vadd.f32 1.0, %v2533_v51 }
 0x519   :  { %2538 = vrcp.f32 %v1278_v59 }
 0x520   :  { %v2535_v53 = vpop.eup %2534 }
 0x521   :  { %v1287_v55 = vmul.f32 %v2535_v53, %v2531_v49  ;;  %v2537_v57 = vpop.eup %2536 }
 0x522   :  { %v1286_v62 = vmul.f32 %v2537_v57, %v3174_v2 }
 0x523   :  { %v2539_v12 = vpop.eup %2538 }
 0x524   :  { %v3219_v63 = vadd.f32 %v1287_v55, %v1286_v62 }
 0x526   :  { %2540 = vtanh.f32 %v3219_v63 }
 0x530   :  { %v2541_v13 = vpop.eup %2540 }
 0x531   :  { %v1290_v18 = vmul.f32 %v2541_v13, %v2539_v12 }
 0x533   :  { %1864 = vst [vmem:[%s3321_s4 + $0x20] sm:$0xff] %v1290_v18  ;;  %1363 = vmatmul.mubr.f32.vlgmr.msra.gmra.mrb[10].mxu0 %v1290_v18  ;;  %1434 = vmatmul.mubr.f32.vlgmr.msra.gmra.mrb[10].mxu1 %v1290_v18 }
 0x534   :  { %2272 = vmatpush1.bf16.msra.mxu0 %v2667_v22  ;;  %2304 = vmatpush1.bf16.msra.mxu1 %v2676_v25 }
 0x535   :  { %2274 = vmatprep.subr.bf16.mxu0 %v2689_v29  ;;  %2306 = vmatprep.subr.bf16.mxu1 %v2705_v34 }
 0x536   :  { %1539 = vmatprep.mubr.f32.mxu0 %v2590_v3  ;;  %1610 = vmatprep.mubr.f32.mxu1 %v2590_v3 }
 0x538   :  { %2276 = vmatpush1.bf16.msra.mxu0 %v2707_v35  ;;  %2308 = vmatpush1.bf16.msra.mxu1 %v2717_v38 }
 0x539   :  { %2278 = vmatprep.subr.bf16.mxu0 %v2730_v42  ;;  %2310 = vmatprep.subr.bf16.mxu1 %v2746_v47 }
 0x53c   :  { %2280 = vmatpush1.bf16.msra.mxu0 %v2756_v50  ;;  %2312 = vmatpush1.bf16.msra.mxu1 %v2769_v54 }
 0x53d   :  { %2282 = vmatprep.subr.bf16.mxu0 %v2782_v58  ;;  %2314 = vmatprep.subr.bf16.mxu1 %v2792_v61 }
 0x540   :  { %2284 = vmatpush1.bf16.msra.mxu0 %v2805_v1  ;;  %2316 = vmatpush1.bf16.msra.mxu1 %v2815_v5 }
 0x541   :  { %2286 = vmatprep.subr.bf16.mxu0 %v2825_v8  ;;  %2318 = vmatprep.subr.bf16.mxu1 %v2835_v11 }
 0x544   :  { %2288 = vmatpush1.bf16.msra.mxu0 %v2848_v15  ;;  %2320 = vmatpush1.bf16.msra.mxu1 %v2858_v19 }
 0x545   :  { %2290 = vmatprep.subr.bf16.mxu0 %v2868_v24  ;;  %2322 = vmatprep.subr.bf16.mxu1 %v2878_v28 }
 0x548   :  { %2292 = vmatpush1.bf16.msra.mxu0 %v2891_v33  ;;  %2324 = vmatpush1.bf16.msra.mxu1 %v2901_v39 }
 0x549   :  { %2294 = vmatprep.subr.bf16.mxu0 %v2911_v43  ;;  %2326 = vmatprep.subr.bf16.mxu1 %v2921_v46 }
 0x54c   :  { %2296 = vmatpush1.bf16.msra.mxu0 %v2934_v52  ;;  %2328 = vmatpush1.bf16.msra.mxu1 %v2944_v56 }
 0x54d   :  { %2298 = vmatprep.subr.bf16.mxu0 %v2954_v60  ;;  %2330 = vmatprep.subr.bf16.mxu1 %v2964_v0 }
 0x550   :  { %2300 = vmatpush1.bf16.msra.mxu0 %v2971_v4  ;;  %2332 = vmatpush1.bf16.msra.mxu1 %v2975_v6 }
 0x551   :  { %2334 = vmatprep.subr.bf16.mxu0 %v2654_v17  ;;  %2366 = vmatprep.subr.bf16.mxu1 %v2665_v21 }
 0x606   :  { %v1364_v2 = vpop.f32.mrb[10].mxu0  ;;  %v1435_v7 = vpop.f32.mrb[10].mxu1 }
 0x607   :  { %v2407_v9 = vadd.f32 %v1364_v2, %v3027_v14  ;;  %v1366_v10 = vpop.f32.mrb[11].mxu0  ;;  %v1437_v20 = vpop.f32.mrb[11].mxu1  ;;  %v2423_v30 = vadd.f32 %v1435_v7, %v3033_v36 }
 0x608   :  { %v2408_v23 = vadd.f32 %v1366_v10, %v3029_v16  ;;  %v2424_v31 = vadd.f32 %v1437_v20, %v3036_v44 }
 0x609   :  { %v1865_v26 = vmul.f32 -1.442695, %v2407_v9  ;;  %v1867_v32 = vmul.f32 -1.442695, %v2423_v30 }
 0x60a   :  { %v1866_v27 = vmul.f32 -1.442695, %v2408_v23 }
 0x60b   :  { %2542 = vpow2.f32 %v1865_v26 }
 0x60c   :  { %2544 = vpow2.f32 %v1866_v27 }
 0x60d   :  { %2546 = vtanh.f32 %v2424_v31 }
 0x60e   :  { %2548 = vpow2.f32 %v1867_v32 }
 0x615   :  { %v2543_v17 = vpop.eup %2542 }
 0x616   :  { %v1453_v37 = vadd.f32 1.0, %v2543_v17  ;;  %v2545_v21 = vpop.eup %2544 }
 0x617   :  { %v1454_v40 = vadd.f32 1.0, %v2545_v21  ;;  %v2547_v41 = vpop.eup %2546 }
 0x618   :  { %2550 = vrcp.f32 %v1453_v37  ;;  %v2549_v45 = vpop.eup %2548 }
 0x619   :  { %2552 = vrcp.f32 %v1454_v40  ;;  %v1455_v53 = vadd.f32 1.0, %v2549_v45 }
 0x61b   :  { %2554 = vrcp.f32 %v1455_v53 }
 0x622   :  { %v2551_v48 = vpop.eup %2550 }
 0x623   :  { %v1464_v49 = vmul.f32 %v2551_v48, %v2547_v41  ;;  %v2553_v51 = vpop.eup %2552 }
 0x624   :  { %v1463_v55 = vmul.f32 %v2553_v51, %v3219_v63 }
 0x625   :  { %v2555_v59 = vpop.eup %2554 }
 0x626   :  { %v3264_v57 = vadd.f32 %v1464_v49, %v1463_v55 }
 0x628   :  { %2556 = vtanh.f32 %v3264_v57 }
 0x632   :  { %v2557_v62 = vpop.eup %2556 }
 0x633   :  { %v1467_v12 = vmul.f32 %v2557_v62, %v2555_v59 }
 0x635   :  { %1868 = vst [vmem:[%s3321_s4 + $0x28] sm:$0xff] %v1467_v12  ;;  %1540 = vmatmul.mubr.f32.vlgmr.msra.gmra.mrb[12].mxu0 %v1467_v12  ;;  %1611 = vmatmul.mubr.f32.vlgmr.msra.gmra.mrb[12].mxu1 %v1467_v12 }
 0x636   :  { %2336 = vmatpush1.bf16.msra.mxu0 %v2667_v22  ;;  %2368 = vmatpush1.bf16.msra.mxu1 %v2676_v25 }
 0x637   :  { %2338 = vmatprep.subr.bf16.mxu0 %v2689_v29  ;;  %2370 = vmatprep.subr.bf16.mxu1 %v2705_v34 }
 0x638   :  { %1716 = vmatprep.mubr.f32.mxu0 %v2590_v3  ;;  %1787 = vmatprep.mubr.f32.mxu1 %v2590_v3 }
 0x63a   :  { %2340 = vmatpush1.bf16.msra.mxu0 %v2707_v35  ;;  %2372 = vmatpush1.bf16.msra.mxu1 %v2717_v38 }
 0x63b   :  { %2342 = vmatprep.subr.bf16.mxu0 %v2730_v42  ;;  %2374 = vmatprep.subr.bf16.mxu1 %v2746_v47 }
 0x63e   :  { %2344 = vmatpush1.bf16.msra.mxu0 %v2756_v50  ;;  %2376 = vmatpush1.bf16.msra.mxu1 %v2769_v54 }
 0x63f   :  { %2346 = vmatprep.subr.bf16.mxu0 %v2782_v58  ;;  %2378 = vmatprep.subr.bf16.mxu1 %v2792_v61 }
 0x642   :  { %2348 = vmatpush1.bf16.msra.mxu0 %v2805_v1  ;;  %2380 = vmatpush1.bf16.msra.mxu1 %v2815_v5 }
 0x643   :  { %2350 = vmatprep.subr.bf16.mxu0 %v2825_v8  ;;  %2382 = vmatprep.subr.bf16.mxu1 %v2835_v11 }
 0x646   :  { %2352 = vmatpush1.bf16.msra.mxu0 %v2848_v15  ;;  %2384 = vmatpush1.bf16.msra.mxu1 %v2858_v19 }
 0x647   :  { %2354 = vmatprep.subr.bf16.mxu0 %v2868_v24  ;;  %2386 = vmatprep.subr.bf16.mxu1 %v2878_v28 }
 0x64a   :  { %2356 = vmatpush1.bf16.msra.mxu0 %v2891_v33  ;;  %2388 = vmatpush1.bf16.msra.mxu1 %v2901_v39 }
 0x64b   :  { %2358 = vmatprep.subr.bf16.mxu0 %v2911_v43  ;;  %2390 = vmatprep.subr.bf16.mxu1 %v2921_v46 }
 0x64e   :  { %2360 = vmatpush1.bf16.msra.mxu0 %v2934_v52  ;;  %2392 = vmatpush1.bf16.msra.mxu1 %v2944_v56 }
 0x64f   :  { %2362 = vmatprep.subr.bf16.mxu0 %v2954_v60  ;;  %2394 = vmatprep.subr.bf16.mxu1 %v2964_v0 }
 0x652   :  { %2364 = vmatpush1.bf16.msra.mxu0 %v2971_v4  ;;  %2396 = vmatpush1.bf16.msra.mxu1 %v2975_v6 }
 0x708   :  { %v1541_v3 = vpop.f32.mrb[12].mxu0  ;;  %v1612_v22 = vpop.f32.mrb[12].mxu1 }
 0x709   :  { %v2409_v25 = vadd.f32 %v1541_v3, %v3027_v14  ;;  %v1543_v29 = vpop.f32.mrb[13].mxu0  ;;  %v1614_v34 = vpop.f32.mrb[13].mxu1  ;;  %v2425_v47 = vadd.f32 %v1612_v22, %v3033_v36 }
 0x70a   :  { %v2410_v35 = vadd.f32 %v1543_v29, %v3029_v16  ;;  %v2426_v50 = vadd.f32 %v1614_v34, %v3036_v44 }
 0x70b   :  { %v1869_v38 = vmul.f32 -1.442695, %v2409_v25  ;;  %v1871_v54 = vmul.f32 -1.442695, %v2425_v47 }
 0x70c   :  { %v1870_v42 = vmul.f32 -1.442695, %v2410_v35 }
 0x70d   :  { %2558 = vpow2.f32 %v1869_v38 }
 0x70e   :  { %2560 = vpow2.f32 %v1870_v42 }
 0x70f   :  { %2562 = vtanh.f32 %v2426_v50 }
 0x710   :  { %2564 = vpow2.f32 %v1871_v54 }
 0x717   :  { %v2559_v58 = vpop.eup %2558 }
 0x718   :  { %v1630_v61 = vadd.f32 1.0, %v2559_v58  ;;  %v2561_v1 = vpop.eup %2560 }
 0x719   :  { %v1631_v5 = vadd.f32 1.0, %v2561_v1  ;;  %v2563_v8 = vpop.eup %2562 }
 0x71a   :  { %2566 = vrcp.f32 %v1630_v61  ;;  %v2565_v11 = vpop.eup %2564 }
 0x71b   :  { %2568 = vrcp.f32 %v1631_v5  ;;  %v1632_v28 = vadd.f32 1.0, %v2565_v11 }
 0x71d   :  { %2570 = vrcp.f32 %v1632_v28 }
 0x724   :  { %v2567_v15 = vpop.eup %2566 }
 0x725   :  { %v1641_v19 = vmul.f32 %v2567_v15, %v2563_v8  ;;  %v2569_v24 = vpop.eup %2568 }
 0x726   :  { %v1640_v33 = vmul.f32 %v2569_v24, %v3264_v57 }
 0x727   :  { %v2571_v43 = vpop.eup %2570 }
 0x728   :  { %v1642_v39 = vadd.f32 %v1641_v19, %v1640_v33 }
 0x72a   :  { %2572 = vtanh.f32 %v1642_v39 }
 0x734   :  { %v2573_v46 = vpop.eup %2572 }
 0x735   :  { %v1644_v52 = vmul.f32 %v2573_v46, %v2571_v43 }
 0x737   :  { %1872 = vst [vmem:[%s3321_s4 + $0x30] sm:$0xff] %v1644_v52  ;;  %1717 = vmatmul.mubr.f32.vlgmr.msra.gmra.mrb[14].mxu0 %v1644_v52  ;;  %1788 = vmatmul.mubr.f32.vlgmr.msra.gmra.mrb[14].mxu1 %v1644_v52 }
 0x80a   :  { %v1718_v56 = vpop.f32.mrb[14].mxu0  ;;  %v1789_v60 = vpop.f32.mrb[14].mxu1 }
 0x80b   :  { %v2411_v0 = vadd.f32 %v1718_v56, %v3027_v14  ;;  %v1720_v4 = vpop.f32.mrb[15].mxu0  ;;  %v1791_v6 = vpop.f32.mrb[15].mxu1  ;;  %v2427_v2 = vadd.f32 %v1789_v60, %v3033_v36 }
 0x80c   :  { %v2412_v63 = vadd.f32 %v1720_v4, %v3029_v16  ;;  %v2428_v7 = vadd.f32 %v1791_v6, %v3036_v44 }
 0x80d   :  { %v1873_v13 = vmul.f32 -1.442695, %v2411_v0  ;;  %v1875_v9 = vmul.f32 -1.442695, %v2427_v2 }
 0x80e   :  { %v1874_v18 = vmul.f32 -1.442695, %v2412_v63 }
 0x80f   :  { %2574 = vpow2.f32 %v1873_v13 }
 0x810   :  { %2576 = vpow2.f32 %v1874_v18 }
 0x811   :  { %2578 = vtanh.f32 %v2428_v7 }
 0x812   :  { %2580 = vpow2.f32 %v1875_v9 }
 0x819   :  { %v2575_v10 = vpop.eup %2574 }
 0x81a   :  { %v1807_v20 = vadd.f32 1.0, %v2575_v10  ;;  %v2577_v23 = vpop.eup %2576 }
 0x81b   :  { %v1808_v14 = vadd.f32 1.0, %v2577_v23  ;;  %v2579_v26 = vpop.eup %2578 }
 0x81c   :  { %2582 = vrcp.f32 %v1807_v20  ;;  %v2581_v27 = vpop.eup %2580 }
 0x81d   :  { %2584 = vrcp.f32 %v1808_v14  ;;  %v1809_v32 = vadd.f32 1.0, %v2581_v27 }
 0x81f   :  { %2586 = vrcp.f32 %v1809_v32 }
 0x826   :  { %v2583_v16 = vpop.eup %2582 }
 0x827   :  { %v1818_v30 = vmul.f32 %v2583_v16, %v2579_v26  ;;  %v2585_v31 = vpop.eup %2584 }
 0x828   :  { %v1817_v17 = vmul.f32 %v2585_v31, %v1642_v39 }
 0x829   :  { %v2587_v36 = vpop.eup %2586 }
 0x82a   :  { %v1819_v37 = vadd.f32 %v1818_v30, %v1817_v17 }
 0x82c   :  { %2588 = vtanh.f32 %v1819_v37 }
 0x836   :  { %v2589_v44 = vpop.eup %2588 }
 0x837   :  { %v1821_v21 = vmul.f32 %v2589_v44, %v2587_v36 }
 0x839   :  { %1876 = vst [vmem:[%s3321_s4 + $0x38] sm:$0xff] %v1821_v21 }

</bundles_post_ra>
